<compile_context>
chip_gen: v6e
topology: v6e:2x2x1
jax: 0.10.0
libtpu: 0.0.40
codegen_flags: <defaults>
</compile_context>

<pallas_src>
import jax
import jax.numpy as jnp
from jax.experimental import pallas as pl
from jax.experimental.pallas import tpu as pltpu


LATENT = 100
LATENT_PAD = 128            # zero-padded latent dim (lane aligned)
H1, H2, H3 = 256, 512, 1024
OUT = 128 * 128 * 3         # 49152
TN_LAST = 4096              # N tile of the 1024 -> 49152 layer (12 grid steps)


# ----------------------------------------------------------------------------
# Kernel 1: fused small MLP  (128pad -> 256 -> 512 -> 1024), ReLU after each.
# ----------------------------------------------------------------------------
def _small_mlp_kernel(x_ref, w1_ref, b1_ref, w2_ref, b2_ref, w3_ref, b3_ref,
                      h_ref):
    h = jnp.dot(x_ref[...], w1_ref[...],
                preferred_element_type=jnp.float32) + b1_ref[...]
    h = jnp.maximum(h, 0.0).astype(jnp.bfloat16)
    h = jnp.dot(h, w2_ref[...],
                preferred_element_type=jnp.float32) + b2_ref[...]
    h = jnp.maximum(h, 0.0).astype(jnp.bfloat16)
    h = jnp.dot(h, w3_ref[...],
                preferred_element_type=jnp.float32) + b3_ref[...]
    h = jnp.maximum(h, 0.0)
    h_ref[...] = h.astype(h_ref.dtype)


def fused_small_mlp(x, w1, b1, w2, b2, w3, b3):
    """x: (B, 128) bf16 -> (B, 1024) bf16.  All weights VMEM-resident."""
    B = x.shape[0]

    def full(shape):
        return pl.BlockSpec(shape, lambda i: (0, 0))

    return pl.pallas_call(
        _small_mlp_kernel,
        out_shape=jax.ShapeDtypeStruct((B, H3), jnp.bfloat16),
        grid_spec=pltpu.PrefetchScalarGridSpec(
            num_scalar_prefetch=0,
            grid=(1,),
            in_specs=[
                full(x.shape),
                full(w1.shape), full(b1.shape),
                full(w2.shape), full(b2.shape),
                full(w3.shape), full(b3.shape),
            ],
            out_specs=full((B, H3)),
        ),
        compiler_params=pltpu.CompilerParams(
            dimension_semantics=("arbitrary",)),
    )(x, w1, b1, w2, b2, w3, b3)


# ----------------------------------------------------------------------------
# Kernel 2: weight-streaming layer  (1024 -> 49152) + Tanh.
# ----------------------------------------------------------------------------
def _last_linear_tanh_kernel(h_ref, w_ref, b_ref, o_ref):
    y = jnp.dot(h_ref[...], w_ref[...], preferred_element_type=jnp.float32)
    y = jnp.tanh(y + b_ref[...])
    o_ref[...] = y.astype(o_ref.dtype)


def big_linear_tanh(h, w, b, *, tn=TN_LAST):
    """h: (B, 1024) bf16, w: (1024, 49152) bf16, b: (1, 49152) f32 -> (B, 49152) f32."""
    B, K = h.shape
    Kw, N = w.shape
    assert K == Kw and N % tn == 0

    cost = pl.CostEstimate(
        flops=2 * B * K * N,
        transcendentals=B * N,  # tanh
        bytes_accessed=(K * N * w.dtype.itemsize
                        + B * K * h.dtype.itemsize
                        + N * 4 + B * N * 4),
    )
    return pl.pallas_call(
        _last_linear_tanh_kernel,
        out_shape=jax.ShapeDtypeStruct((B, N), jnp.float32),
        grid_spec=pltpu.PrefetchScalarGridSpec(
            num_scalar_prefetch=0,
            grid=(N // tn,),
            in_specs=[
                pl.BlockSpec((B, K), lambda j: (0, 0)),    # h: resident, not re-fetched
                pl.BlockSpec((K, tn), lambda j: (0, j)),   # W tile: streamed (bf16)
                pl.BlockSpec((1, tn), lambda j: (0, j)),   # bias tile
            ],
            out_specs=pl.BlockSpec((B, tn), lambda j: (0, j)),  # lane-dense out
        ),
        compiler_params=pltpu.CompilerParams(
            dimension_semantics=("parallel",),   # shards N tiles across TCs on v7x
            vmem_limit_bytes=32 * 1024 * 1024),  # 2x16 MiB W bufs + small bits
        cost_estimate=cost,
    )(h, w, b)


# ----------------------------------------------------------------------------
# Generator parameters & forward
# ----------------------------------------------------------------------------
LAYER_DIMS = [(LATENT, H1), (H1, H2), (H2, H3), (H3, OUT)]


def init_params(key):
    params = []
    for (fan_in, fan_out) in LAYER_DIMS:
        key, kw, kb = jax.random.split(key, 3)
        bound = 1.0 / jnp.sqrt(fan_in)
        # Stored as (in, out): transpose of PyTorch's (out, in) weight.
        w = jax.random.uniform(kw, (fan_in, fan_out), jnp.float32, -bound, bound)
        b = jax.random.uniform(kb, (1, fan_out), jnp.float32, -bound, bound)
        if fan_in == LATENT:
            # Zero-pad latent rows 100 -> 128 (identical math, lane aligned).
            w = jnp.pad(w, ((0, LATENT_PAD - LATENT), (0, 0)))
        # bf16 weights (halves HBM traffic); biases stay f32 (added post-MXU).
        params.append((w.astype(jnp.bfloat16), b))
    return params


def generator_forward(params, z):
    """z: (B, 100) -> (B, 3, 128, 128), tanh output.  Matches Generator.forward."""
    B = z.shape[0]
    (w1, b1), (w2, b2), (w3, b3), (w4, b4) = params
    z = z.astype(jnp.bfloat16)
    z = jnp.pad(z, ((0, 0), (0, LATENT_PAD - LATENT)))   # zero-pad latent dim
    h = fused_small_mlp(z, w1, b1, w2, b2, w3, b3)       # (B, 1024) bf16
    y = big_linear_tanh(h, w4, b4)                       # (B, 49152) f32
    return y.reshape(B, 3, 128, 128)                     # == output.view(...)


def generator_forward_ref(params, z):
    """Pure-JAX reference (same bf16 weights / f32 accumulation)."""
    (w1, b1), (w2, b2), (w3, b3), (w4, b4) = params
    h = z.astype(jnp.bfloat16)
    h = jnp.pad(h, ((0, 0), (0, LATENT_PAD - LATENT)))
    for w, b in ((w1, b1), (w2, b2), (w3, b3)):
        h = jnp.dot(h, w, preferred_element_type=jnp.float32) + b
        h = jnp.maximum(h, 0.0).astype(jnp.bfloat16)
    y = jnp.dot(h, w4, preferred_element_type=jnp.float32) + b4
    y = jnp.tanh(y)
    return y.reshape(z.shape[0], 3, 128, 128)


if __name__ == "__main__":
    key = jax.random.PRNGKey(0)
    kp, kz = jax.random.split(key)

    params = init_params(kp)
    # Small batch; latent size 100 is fixed by the module.
    z = jax.random.normal(kz, (2, LATENT), dtype=jnp.float32)

    out = generator_forward(params, z)
    out = jax.block_until_ready(out)

    assert out.shape == (2, 3, 128, 128)
    assert bool(jnp.all(jnp.isfinite(out)))
    assert bool(jnp.all((out >= -1.0) & (out <= 1.0)))   # tanh range

    ref = jax.block_until_ready(generator_forward_ref(params, z))
    assert bool(jnp.max(jnp.abs(out - ref)) < 3e-2)      # matches pure-JAX ref

    print("KERNEL_OK")
</pallas_src>

<mosaic_0001>
module attributes {stable_mosaic.version = 11 : i64} {
  func.func @_small_mlp_kernel(%arg0: i32, %arg1: memref<2x128xbf16, #tpu.memory_space<vmem>>, %arg2: memref<128x256xbf16, #tpu.memory_space<vmem>>, %arg3: memref<1x256xf32, #tpu.memory_space<vmem>>, %arg4: memref<256x512xbf16, #tpu.memory_space<vmem>>, %arg5: memref<1x512xf32, #tpu.memory_space<vmem>>, %arg6: memref<512x1024xbf16, #tpu.memory_space<vmem>>, %arg7: memref<1x1024xf32, #tpu.memory_space<vmem>>, %arg8: memref<2x1024xbf16, #tpu.memory_space<vmem>>) attributes {dimension_semantics = [#tpu.dimension_semantics<arbitrary>], iteration_bounds = array<i64: 1>, scalar_prefetch = 0 : i64, scratch_operands = 0 : i64, tpu.core_type = #tpu.core_type<tc>, window_params = [{pipeline_mode = #tpu.pipeline_mode<synchronous>, transform_indices = @transform_0, window_bounds = array<i64: 2, 128>}, {pipeline_mode = #tpu.pipeline_mode<synchronous>, transform_indices = @transform_1, window_bounds = array<i64: 128, 256>}, {pipeline_mode = #tpu.pipeline_mode<synchronous>, transform_indices = @transform_2, window_bounds = array<i64: 1, 256>}, {pipeline_mode = #tpu.pipeline_mode<synchronous>, transform_indices = @transform_3, window_bounds = array<i64: 256, 512>}, {pipeline_mode = #tpu.pipeline_mode<synchronous>, transform_indices = @transform_4, window_bounds = array<i64: 1, 512>}, {pipeline_mode = #tpu.pipeline_mode<synchronous>, transform_indices = @transform_5, window_bounds = array<i64: 512, 1024>}, {pipeline_mode = #tpu.pipeline_mode<synchronous>, transform_indices = @transform_6, window_bounds = array<i64: 1, 1024>}, {pipeline_mode = #tpu.pipeline_mode<synchronous>, transform_indices = @transform_7, window_bounds = array<i64: 2, 1024>}]} {
    %c0 = arith.constant 0 : index
    %c0_0 = arith.constant 0 : index
    %0 = vector.load %arg1[%c0, %c0_0] : memref<2x128xbf16, #tpu.memory_space<vmem>>, vector<2x128xbf16>
    %c0_1 = arith.constant 0 : index
    %c0_2 = arith.constant 0 : index
    %1 = vector.load %arg2[%c0_1, %c0_2] : memref<128x256xbf16, #tpu.memory_space<vmem>>, vector<128x256xbf16>
    %cst = arith.constant dense<0.000000e+00> : vector<2x256xf32>
    %2 = tpu.matmul %0, %1, %cst {dimension_numbers = #tpu.dot_dimension_numbers<[1], [0], [0], [1], [0, 0, 1, 1], [], []>} : vector<2x128xbf16>, vector<128x256xbf16>, vector<2x256xf32> -> vector<2x256xf32>
    %c0_3 = arith.constant 0 : index
    %c0_4 = arith.constant 0 : index
    %3 = vector.load %arg3[%c0_3, %c0_4] : memref<1x256xf32, #tpu.memory_space<vmem>>, vector<1x256xf32>
    %4 = vector.broadcast %3 : vector<1x256xf32> to vector<2x256xf32>
    %5 = arith.addf %2, %4 : vector<2x256xf32>
    %cst_5 = arith.constant 0.000000e+00 : f32
    %6 = vector.broadcast %cst_5 : f32 to vector<2x256xf32>
    %7 = arith.maximumf %5, %6 : vector<2x256xf32>
    %8 = arith.truncf %7 : vector<2x256xf32> to vector<2x256xbf16>
    %c0_6 = arith.constant 0 : index
    %c0_7 = arith.constant 0 : index
    %9 = vector.load %arg4[%c0_6, %c0_7] : memref<256x512xbf16, #tpu.memory_space<vmem>>, vector<256x512xbf16>
    %cst_8 = arith.constant dense<0.000000e+00> : vector<2x512xf32>
    %10 = tpu.matmul %8, %9, %cst_8 {dimension_numbers = #tpu.dot_dimension_numbers<[1], [0], [0], [1], [0, 0, 1, 1], [], []>} : vector<2x256xbf16>, vector<256x512xbf16>, vector<2x512xf32> -> vector<2x512xf32>
    %c0_9 = arith.constant 0 : index
    %c0_10 = arith.constant 0 : index
    %11 = vector.load %arg5[%c0_9, %c0_10] : memref<1x512xf32, #tpu.memory_space<vmem>>, vector<1x512xf32>
    %12 = vector.broadcast %11 : vector<1x512xf32> to vector<2x512xf32>
    %13 = arith.addf %10, %12 : vector<2x512xf32>
    %cst_11 = arith.constant 0.000000e+00 : f32
    %14 = vector.broadcast %cst_11 : f32 to vector<2x512xf32>
    %15 = arith.maximumf %13, %14 : vector<2x512xf32>
    %16 = arith.truncf %15 : vector<2x512xf32> to vector<2x512xbf16>
    %c0_12 = arith.constant 0 : index
    %c0_13 = arith.constant 0 : index
    %17 = vector.load %arg6[%c0_12, %c0_13] : memref<512x1024xbf16, #tpu.memory_space<vmem>>, vector<512x1024xbf16>
    %cst_14 = arith.constant dense<0.000000e+00> : vector<2x1024xf32>
    %18 = tpu.matmul %16, %17, %cst_14 {dimension_numbers = #tpu.dot_dimension_numbers<[1], [0], [0], [1], [0, 0, 1, 1], [], []>} : vector<2x512xbf16>, vector<512x1024xbf16>, vector<2x1024xf32> -> vector<2x1024xf32>
    %c0_15 = arith.constant 0 : index
    %c0_16 = arith.constant 0 : index
    %19 = vector.load %arg7[%c0_15, %c0_16] : memref<1x1024xf32, #tpu.memory_space<vmem>>, vector<1x1024xf32>
    %20 = vector.broadcast %19 : vector<1x1024xf32> to vector<2x1024xf32>
    %21 = arith.addf %18, %20 : vector<2x1024xf32>
    %cst_17 = arith.constant 0.000000e+00 : f32
    %22 = vector.broadcast %cst_17 : f32 to vector<2x1024xf32>
    %23 = arith.maximumf %21, %22 : vector<2x1024xf32>
    %24 = arith.truncf %23 : vector<2x1024xf32> to vector<2x1024xbf16>
    %c0_18 = arith.constant 0 : index
    %c0_19 = arith.constant 0 : index
    %25 = vector.load %arg8[%c0_18, %c0_19] : memref<2x1024xbf16, #tpu.memory_space<vmem>>, vector<2x1024xbf16>
    tpu.vector_store %arg8[%c0_18, %c0_19], %24 {strides = array<i32>} : memref<2x1024xbf16, #tpu.memory_space<vmem>>, vector<2x1024xbf16>,
    return
  }
  func.func @transform_0(%arg0: i32) -> (i32, i32) {
    %c0_i32 = arith.constant 0 : i32
    %c0_i32_0 = arith.constant 0 : i32
    %c0_i32_1 = arith.constant 0 : i32
    return %c0_i32, %c0_i32_0 : i32, i32
  }
  func.func @transform_1(%arg0: i32) -> (i32, i32) {
    %c0_i32 = arith.constant 0 : i32
    %c0_i32_0 = arith.constant 0 : i32
    %c0_i32_1 = arith.constant 0 : i32
    return %c0_i32, %c0_i32_0 : i32, i32
  }
  func.func @transform_2(%arg0: i32) -> (i32, i32) {
    %c0_i32 = arith.constant 0 : i32
    %c0_i32_0 = arith.constant 0 : i32
    %c0_i32_1 = arith.constant 0 : i32
    return %c0_i32, %c0_i32_0 : i32, i32
  }
  func.func @transform_3(%arg0: i32) -> (i32, i32) {
    %c0_i32 = arith.constant 0 : i32
    %c0_i32_0 = arith.constant 0 : i32
    %c0_i32_1 = arith.constant 0 : i32
    return %c0_i32, %c0_i32_0 : i32, i32
  }
  func.func @transform_4(%arg0: i32) -> (i32, i32) {
    %c0_i32 = arith.constant 0 : i32
    %c0_i32_0 = arith.constant 0 : i32
    %c0_i32_1 = arith.constant 0 : i32
    return %c0_i32, %c0_i32_0 : i32, i32
  }
  func.func @transform_5(%arg0: i32) -> (i32, i32) {
    %c0_i32 = arith.constant 0 : i32
    %c0_i32_0 = arith.constant 0 : i32
    %c0_i32_1 = arith.constant 0 : i32
    return %c0_i32, %c0_i32_0 : i32, i32
  }
  func.func @transform_6(%arg0: i32) -> (i32, i32) {
    %c0_i32 = arith.constant 0 : i32
    %c0_i32_0 = arith.constant 0 : i32
    %c0_i32_1 = arith.constant 0 : i32
    return %c0_i32, %c0_i32_0 : i32, i32
  }
  func.func @transform_7(%arg0: i32) -> (i32, i32) {
    %c0_i32 = arith.constant 0 : i32
    %c0_i32_0 = arith.constant 0 : i32
    %c0_i32_1 = arith.constant 0 : i32
    return %c0_i32, %c0_i32_0 : i32, i32
  }
}

</mosaic_0001>

<bundles_post_ra>
// kernel: tpu_custom_call.1
= control target key start
LH: loop header
LB: loop body
LE: loop exit
PB: predicated region body
PF: predicated region fallthrough
CT: control target
= control target key end

     0   :  { %12 = vsyncpa [#allocation3], 0  ;;  %s3483_s0 = inlined_call_operand.hbm [shape: bf16[2,128], index: 0, kind: input, shape index: {}]   ;;  %s3484_s1 = inlined_call_operand.hbm [shape: bf16[128,256], index: 1, kind: input, shape index: {}]   ;;  %s3485_s2 = inlined_call_operand.vmem [shape: f32[1,256], index: 2, kind: input, shape index: {}]   ;;  %s3486_s3 = inlined_call_operand.hbm [shape: bf16[256,512], index: 3, kind: input, shape index: {}]   ;;  %s3487_s4 = inlined_call_operand.hbm [shape: f32[1,512], index: 4, kind: input, shape index: {}]   ;;  %s3488_s5 = inlined_call_operand.hbm [shape: bf16[512,1024], index: 5, kind: input, shape index: {}]   ;;  %s3489_s6 = inlined_call_operand.vmem [shape: f32[1,1024], index: 6, kind: input, shape index: {}]   ;;  %s3490_s7 = inlined_call_operand.hbm [shape: bf16[2,1024], index: 7, kind: output, shape index: {}]  }
   0x1   :  { %13 = vsyncpa [#allocation6], 0 }
   0x2   :  { %14 = vsyncpa [#allocation9], 0 }
   0x3   :  { %15 = vsyncpa [#allocation4], 0  ;;  %s3342_s24 = smov [#allocation5]  }
   0x4   :  { %s31_s25 = sshll.u32 %s3342_s24, 4  ;;  %s32_s25 = int_to_ptr.vmem [resolvable:$true] %s31_s25 }
   0x5   :  { %s3222_s26 = scalar_lea.vmem %s32_s25, 2048  ;;  %p3227_p1 = scmp.lt.s32.totalorder %s32_s25, %s32_s25 }
   0x6   :  { %p3223_p0 = scmp.ne.s32.totalorder %s32_s25, %s3222_s26  ;;  %p3228_p2 = scmp.lt.s32.totalorder %s3222_s26, %s3222_s26 }
   0x8   :  { %p3229_p3 = por %p3228_p2, %p3227_p1 }
   0xa   :  { %p3230_p4 = pnand %p3229_p3, %p3223_p0 }
   0xc   :  { %3233 = shalt.err (!%p3230_p4)
}
   0xd   :  { %s3343_s27 = smov 128   ;;  %s3344_s28 = smov 8  }
   0xe   :  { %37 = dma.hbm_to_vmem [thread:$0]  %s3484_s1, 2048, %s32_s25, [#allocation6], %s3343_s27, %s3343_s27, %s3344_s28  }
   0xf   :  { %s3345_s8 = smov [#allocation8]   ;;  %s3346_s10 = smov [#allocation2]  }
  0x10   :  { %s58_s9 = sshll.u32 %s3345_s8, 4  ;;  %s22_s11 = sshll.u32 %s3346_s10, 4  ;;  %s59_s9 = int_to_ptr.vmem [resolvable:$true] %s58_s9  ;;  %s23_s11 = int_to_ptr.vmem [resolvable:$true] %s22_s11 }
  0x11   :  { %s3242_s12 = scalar_lea.vmem %s59_s9, 64  ;;  %p3247_p6 = scmp.lt.s32.totalorder %s59_s9, %s59_s9 }
  0x12   :  { %p3243_p5 = scmp.ne.s32.totalorder %s59_s9, %s3242_s12  ;;  %p3248_p7 = scmp.lt.s32.totalorder %s3242_s12, %s3242_s12 }
  0x14   :  { %p3249_p8 = por %p3248_p7, %p3247_p6 }
  0x16   :  { %p3250_p9 = pnand %p3249_p8, %p3243_p5 }
  0x18   :  { %3253 = shalt.err (!%p3250_p9)
}
  0x19   :  { %61 = dma.hbm_to_vmem [thread:$0]  %s3487_s4, 64, %s59_s9, [#allocation9]  }
  0x1a   :  { %s3262_s15 = scalar_lea.vmem %s23_s11, 16  ;;  %s3266_s1 = scalar_lea.vmem %s23_s11, 32 }
  0x1b   :  { %p3263_p10 = scmp.ne.s32.totalorder %s23_s11, %s3262_s15  ;;  %p3267_p11 = scmp.lt.s32.totalorder %s23_s11, %s23_s11 }
  0x1c   :  { %p3268_p12 = scmp.lt.s32.totalorder %s3266_s1, %s3262_s15 }
  0x1e   :  { %p3269_p13 = por %p3268_p12, %p3267_p11 }
  0x20   :  { %p3270_p0 = pnand %p3269_p13, %p3263_p10 }
  0x22   :  { %3273 = shalt.err (!%p3270_p0)
}
  0x23   :  { %25 = dma.hbm_to_vmem [thread:$0]  %s3483_s0, 16, %s23_s11, [#allocation3]  }
  0x24   :  { %s3347_s18 = smov [#allocation7]  }
  0x25   :  { %s45_s19 = sshll.u32 %s3347_s18, 4  ;;  %s46_s19 = int_to_ptr.vmem [resolvable:$true] %s45_s19 }
  0x26   :  { %s3282_s20 = scalar_lea.vmem %s46_s19, 8192  ;;  %p3287_p2 = scmp.lt.s32.totalorder %s46_s19, %s46_s19 }
  0x27   :  { %p3283_p1 = scmp.ne.s32.totalorder %s46_s19, %s3282_s20  ;;  %p3288_p3 = scmp.lt.s32.totalorder %s3282_s20, %s3282_s20 }
  0x29   :  { %p3289_p4 = por %p3288_p3, %p3287_p2 }
  0x2b   :  { %p3290_p5 = pnand %p3289_p4, %p3283_p1 }
  0x2d   :  { %3293 = shalt.err (!%p3290_p5)
}
  0x2e   :  { %s3348_s4 = smov 256   ;;  %s3349_s21 = smov 16  }
  0x2f   :  { %51 = dma.hbm_to_vmem [thread:$0]  %s3486_s3, 8192, %s46_s19, [#allocation6], %s3348_s4, %s3348_s4, %s3349_s21  }
  0x30   :  { %s3350_s24 = smov [#allocation10]  }
  0x31   :  { %s67_s25 = sshll.u32 %s3350_s24, 4  ;;  %s68_s25 = int_to_ptr.vmem [resolvable:$true] %s67_s25 }
  0x32   :  { %s3302_s0 = scalar_lea.vmem %s68_s25, 32768  ;;  %p3307_p7 = scmp.lt.s32.totalorder %s68_s25, %s68_s25 }
  0x33   :  { %p3303_p6 = scmp.ne.s32.totalorder %s68_s25, %s3302_s0  ;;  %p3308_p8 = scmp.lt.s32.totalorder %s3302_s0, %s3302_s0 }
  0x35   :  { %p3309_p9 = por %p3308_p8, %p3307_p7 }
  0x37   :  { %p3310_p10 = pnand %p3309_p9, %p3303_p6 }
  0x39   :  { %3313 = shalt.err (!%p3310_p10)
}
  0x3a   :  { %s3351_s26 = smov 512   ;;  %s3352_s27 = smov 32  }
  0x3b   :  { %73 = dma.hbm_to_vmem [thread:$0]  %s3488_s5, 32768, %s68_s25, [#allocation9], %s3351_s26, %s3351_s26, %s3352_s27  }
  0x3c   :  { %3334 = dma.done.wait [#allocation3], 16  }
  0x3d   :  { %3335 = vsyncadd [#allocation3], 4294967280 }
  0x3e   :  { %3336 = dma.done.wait [#allocation6], 10240  }
  0x3f   :  { %3337 = vsyncadd [#allocation6], 4294957056 }
  0x40   :  { %3338 = dma.done.wait [#allocation9], 32832  }
  0x41   :  { %3339 = vsyncadd [#allocation9], 4294934464  ;;  %v3353_v0 = vmov 0   ;;  %v3094_v1 = vld [vmem:[#allocation5 + $0x74] ss:$8 sps:$4 sm:$0xff]  }
  0x42   :  { %233 = vmatprep.mubr.bf16.mxu0 %v3353_v0  ;;  %v3096_v2 = vld [vmem:[#allocation5 + $0x70] ss:$8 sps:$4 sm:$0xff]   ;;  %201 = vmatprep.subr.bf16.mxu0 %v3094_v1  ;;  %v3097_v3 = vld [vmem:[#allocation5 + $0x64] ss:$8 sps:$4 sm:$0xff]   ;;  %v3099_v4 = vld [vmem:[#allocation5 + $0x60] ss:$8 sps:$4 sm:$0xff]  }
  0x43   :  { %202 = vmatpush1.bf16.msra.mxu0 %v3096_v2  ;;  %v3100_v5 = vld [vmem:[#allocation5 + $0x54] ss:$8 sps:$4 sm:$0xff]   ;;  %v3102_v6 = vld [vmem:[#allocation5 + $0x50] ss:$8 sps:$4 sm:$0xff]   ;;  %v3103_v7 = vld [vmem:[#allocation5 + $0x44] ss:$8 sps:$4 sm:$0xff]  }
  0x44   :  { %203 = vmatprep.subr.bf16.mxu0 %v3097_v3  ;;  %v3105_v8 = vld [vmem:[#allocation5 + $0x40] ss:$8 sps:$4 sm:$0xff]   ;;  %v3118_v9 = vld [vmem:[#allocation7 + $0xe4] ss:$16 sps:$4 sm:$0xff]   ;;  %v3108_v13 = vld [vmem:[#allocation5 + $0x30] ss:$8 sps:$4 sm:$0xff]  }
  0x45   :  { %v3106_v10 = vld [vmem:[#allocation5 + $0x34] ss:$8 sps:$4 sm:$0xff]   ;;  %652 = vmatprep.subr.bf16.mxu1 %v3118_v9  ;;  %v3123_v11 = vld [vmem:[#allocation7 + $0xe0] ss:$16 sps:$4 sm:$0xff]   ;;  %v3109_v14 = vld [vmem:[#allocation5 + $0x24] ss:$8 sps:$4 sm:$0xff]  }
  0x46   :  { %v3124_v12 = vld [vmem:[#allocation7 + $0xc4] ss:$16 sps:$4 sm:$0xff]   ;;  %653 = vmatpush1.bf16.msra.mxu1 %v3123_v11  ;;  %v3129_v15 = vld [vmem:[#allocation7 + $0xc0] ss:$16 sps:$4 sm:$0xff]   ;;  %v3122_v26 = vld [vmem:[#allocation7 + $0xec] ss:$16 sps:$4 sm:$0xff]  }
  0x47   :  { %204 = vmatpush1.bf16.msra.mxu0 %v3099_v4  ;;  %654 = vmatprep.subr.bf16.mxu1 %v3124_v12  ;;  %v3130_v16 = vld [vmem:[#allocation7 + $0xa4] ss:$16 sps:$4 sm:$0xff]   ;;  %v3111_v17 = vld [vmem:[#allocation5 + $0x20] ss:$8 sps:$4 sm:$0xff]   ;;  %v3114_v21 = vld [vmem:[#allocation5 + $0x10] ss:$8 sps:$4 sm:$0xff]  }
  0x48   :  { %205 = vmatprep.subr.bf16.mxu0 %v3100_v5  ;;  %v3112_v18 = vld [vmem:[#allocation5 + $0x14] ss:$8 sps:$4 sm:$0xff]   ;;  %v3135_v19 = vld [vmem:[#allocation7 + $0xa0] ss:$16 sps:$4 sm:$0xff]   ;;  %v3115_v22 = vld [vmem:[#allocation5 + $0x4] ss:$8 sps:$4 sm:$0xff]  }
  0x49   :  { %v3136_v20 = vld [vmem:[#allocation7 + $0x84] ss:$16 sps:$4 sm:$0xff]   ;;  %v3141_v23 = vld [vmem:[#allocation7 + $0x80] ss:$16 sps:$4 sm:$0xff]   ;;  %v92_v29 = vld [vmem:[#allocation2] sm:$0x1] }
  0x4a   :  { %655 = vmatpush1.bf16.msra.mxu1 %v3129_v15  ;;  %v3142_v24 = vld [vmem:[#allocation7 + $0x64] ss:$16 sps:$4 sm:$0xff]   ;;  %v3117_v25 = vld [vmem:[#allocation5] ss:$8 sps:$4 sm:$0xff]   ;;  %v3128_v31 = vld [vmem:[#allocation7 + $0xcc] ss:$16 sps:$4 sm:$0xff]  }
  0x4b   :  { %206 = vmatpush1.bf16.msra.mxu0 %v3102_v6  ;;  %656 = vmatprep.subr.bf16.mxu1 %v3130_v16  ;;  %v3147_v27 = vld [vmem:[#allocation7 + $0x60] ss:$16 sps:$4 sm:$0xff]   ;;  %v3148_v28 = vld [vmem:[#allocation7 + $0x44] ss:$16 sps:$4 sm:$0xff]   ;;  %v3120_v30 = vld [vmem:[#allocation7 + $0xe8] ss:$16 sps:$4 sm:$0xff]  }
  0x4c   :  { %207 = vmatprep.subr.bf16.mxu0 %v3103_v7  ;;  %v3153_v32 = vld [vmem:[#allocation7 + $0x40] ss:$16 sps:$4 sm:$0xff]   ;;  %v3154_v33 = vld [vmem:[#allocation7 + $0x24] ss:$16 sps:$4 sm:$0xff]   ;;  %v3126_v34 = vld [vmem:[#allocation7 + $0xc8] ss:$16 sps:$4 sm:$0xff]  }
  0x4d   :  { %v3134_v35 = vld [vmem:[#allocation7 + $0xac] ss:$16 sps:$4 sm:$0xff]   ;;  %v3159_v36 = vld [vmem:[#allocation7 + $0x20] ss:$16 sps:$4 sm:$0xff]   ;;  %v3160_v37 = vld [vmem:[#allocation7 + $0x4] ss:$16 sps:$4 sm:$0xff]  }
  0x4e   :  { %657 = vmatpush1.bf16.msra.mxu1 %v3135_v19  ;;  %v3132_v38 = vld [vmem:[#allocation7 + $0xa8] ss:$16 sps:$4 sm:$0xff]   ;;  %v3140_v39 = vld [vmem:[#allocation7 + $0x8c] ss:$16 sps:$4 sm:$0xff]   ;;  %v3165_v40 = vld [vmem:[#allocation7] ss:$16 sps:$4 sm:$0xff]  }
  0x4f   :  { %208 = vmatpush1.bf16.msra.mxu0 %v3105_v8  ;;  %658 = vmatprep.subr.bf16.mxu1 %v3136_v20  ;;  %v3166_v41 = vld [vmem:[#allocation7 + $0x1e4] ss:$16 sps:$4 sm:$0xff]   ;;  %v3138_v42 = vld [vmem:[#allocation7 + $0x88] ss:$16 sps:$4 sm:$0xff]   ;;  %v3146_v43 = vld [vmem:[#allocation7 + $0x6c] ss:$16 sps:$4 sm:$0xff]  }
  0x50   :  { %209 = vmatprep.subr.bf16.mxu0 %v3106_v10  ;;  %v3171_v44 = vld [vmem:[#allocation7 + $0x1e0] ss:$16 sps:$4 sm:$0xff]   ;;  %v3172_v45 = vld [vmem:[#allocation7 + $0x1c4] ss:$16 sps:$4 sm:$0xff]   ;;  %v3144_v46 = vld [vmem:[#allocation7 + $0x68] ss:$16 sps:$4 sm:$0xff]  }
  0x51   :  { %v3177_v47 = vld [vmem:[#allocation7 + $0x1c0] ss:$16 sps:$4 sm:$0xff]   ;;  %v3152_v48 = vld [vmem:[#allocation7 + $0x4c] ss:$16 sps:$4 sm:$0xff]   ;;  %v3178_v49 = vld [vmem:[#allocation7 + $0x1a4] ss:$16 sps:$4 sm:$0xff]  }
  0x52   :  { %659 = vmatpush1.bf16.msra.mxu1 %v3141_v23  ;;  %v3150_v50 = vld [vmem:[#allocation7 + $0x48] ss:$16 sps:$4 sm:$0xff]   ;;  %v3183_v51 = vld [vmem:[#allocation7 + $0x1a0] ss:$16 sps:$4 sm:$0xff]   ;;  %v3158_v52 = vld [vmem:[#allocation7 + $0x2c] ss:$16 sps:$4 sm:$0xff]  }
  0x53   :  { %210 = vmatpush1.bf16.msra.mxu0 %v3108_v13  ;;  %660 = vmatprep.subr.bf16.mxu1 %v3142_v24  ;;  %v3184_v53 = vld [vmem:[#allocation7 + $0x184] ss:$16 sps:$4 sm:$0xff]   ;;  %v3156_v54 = vld [vmem:[#allocation7 + $0x28] ss:$16 sps:$4 sm:$0xff]   ;;  %v3189_v55 = vld [vmem:[#allocation7 + $0x180] ss:$16 sps:$4 sm:$0xff]  }
  0x54   :  { %211 = vmatprep.subr.bf16.mxu0 %v3109_v14  ;;  %v3164_v56 = vld [vmem:[#allocation7 + $0xc] ss:$16 sps:$4 sm:$0xff]   ;;  %v3190_v57 = vld [vmem:[#allocation7 + $0x164] ss:$16 sps:$4 sm:$0xff]   ;;  %v3162_v58 = vld [vmem:[#allocation7 + $0x8] ss:$16 sps:$4 sm:$0xff]  }
  0x55   :  { %v3195_v59 = vld [vmem:[#allocation7 + $0x160] ss:$16 sps:$4 sm:$0xff]   ;;  %v3170_v60 = vld [vmem:[#allocation7 + $0x1ec] ss:$16 sps:$4 sm:$0xff]   ;;  %v3196_v61 = vld [vmem:[#allocation7 + $0x144] ss:$16 sps:$4 sm:$0xff]  }
  0x56   :  { %661 = vmatpush1.bf16.msra.mxu1 %v3147_v27  ;;  %v3168_v62 = vld [vmem:[#allocation7 + $0x1e8] ss:$16 sps:$4 sm:$0xff]   ;;  %v3201_v63 = vld [vmem:[#allocation7 + $0x140] ss:$16 sps:$4 sm:$0xff]   ;;  %v3176_v0 = vld [vmem:[#allocation7 + $0x1cc] ss:$16 sps:$4 sm:$0xff]  }
  0x57   :  { %212 = vmatpush1.bf16.msra.mxu0 %v3111_v17  ;;  %662 = vmatprep.subr.bf16.mxu1 %v3148_v28  ;;  %v3174_v1 = vld [vmem:[#allocation7 + $0x1c8] ss:$16 sps:$4 sm:$0xff]   ;;  %v3182_v2 = vld [vmem:[#allocation7 + $0x1ac] ss:$16 sps:$4 sm:$0xff]   ;;  %v3202_v10 = vld [vmem:[#allocation7 + $0x124] ss:$16 sps:$4 sm:$0xff]  }
  0x58   :  { %213 = vmatprep.subr.bf16.mxu0 %v3112_v18  ;;  %v3180_v3 = vld [vmem:[#allocation7 + $0x1a8] ss:$16 sps:$4 sm:$0xff]   ;;  %v3188_v4 = vld [vmem:[#allocation7 + $0x18c] ss:$16 sps:$4 sm:$0xff]   ;;  %v3207_v13 = vld [vmem:[#allocation7 + $0x120] ss:$16 sps:$4 sm:$0xff]  }
  0x59   :  { %v3186_v5 = vld [vmem:[#allocation7 + $0x188] ss:$16 sps:$4 sm:$0xff]   ;;  %v3194_v6 = vld [vmem:[#allocation7 + $0x16c] ss:$16 sps:$4 sm:$0xff]   ;;  %v3208_v14 = vld [vmem:[#allocation7 + $0x104] ss:$16 sps:$4 sm:$0xff]  }
  0x5a   :  { %663 = vmatpush1.bf16.msra.mxu1 %v3153_v32  ;;  %v3192_v7 = vld [vmem:[#allocation7 + $0x168] ss:$16 sps:$4 sm:$0xff]   ;;  %v3200_v8 = vld [vmem:[#allocation7 + $0x14c] ss:$16 sps:$4 sm:$0xff]   ;;  %v3213_v17 = vld [vmem:[#allocation7 + $0x100] ss:$16 sps:$4 sm:$0xff]  }
  0x5b   :  { %214 = vmatpush1.bf16.msra.mxu0 %v3114_v21  ;;  %664 = vmatprep.subr.bf16.mxu1 %v3154_v33  ;;  %v3198_v9 = vld [vmem:[#allocation7 + $0x148] ss:$16 sps:$4 sm:$0xff]   ;;  %v3206_v11 = vld [vmem:[#allocation7 + $0x12c] ss:$16 sps:$4 sm:$0xff]  }
  0x5c   :  { %215 = vmatprep.subr.bf16.mxu0 %v3115_v22  ;;  %v3204_v12 = vld [vmem:[#allocation7 + $0x128] ss:$16 sps:$4 sm:$0xff]   ;;  %v3212_v15 = vld [vmem:[#allocation7 + $0x10c] ss:$16 sps:$4 sm:$0xff]  }
  0x5d   :  { %v3210_v16 = vld [vmem:[#allocation7 + $0x108] ss:$16 sps:$4 sm:$0xff]  }
  0x5e   :  { %665 = vmatpush1.bf16.msra.mxu1 %v3159_v36  ;;  %v798_v18 = vld [vmem:[#allocation10 + $0x1c0] sm:$0xff] }
  0x5f   :  { %216 = vmatpush1.bf16.msra.mxu0 %v3117_v25  ;;  %666 = vmatprep.subr.bf16.mxu1 %v3160_v37  ;;  %v802_v19 = vld [vmem:[#allocation10 + $0x1e0] sm:$0xff] }
  0x60   :  { %693 = vmatprep.subr.bf16.mxu0 %v3122_v26  ;;  %v926_v20 = vld [vmem:[#allocation10 + $0x5c0] sm:$0xff]  ;;  %v2876_v21 = vcombine.low %v798_v18, %v802_v19  ;;  %v2877_v22 = vcombine.high %v798_v18, %v802_v19  ;;  %v111_v26 = vlaneseq }
  0x61   :  { %v930_v23 = vld [vmem:[#allocation10 + $0x5e0] sm:$0xff] }
  0x62   :  { %234 = vmatmul.mubr.bf16.vlgmr.msra.gmra.mxu0 %v92_v29  ;;  %667 = vmatpush1.bf16.msra.mxu1 %v3165_v40  ;;  %v3004_v24 = vcombine.low %v926_v20, %v930_v23  ;;  %v3005_v25 = vcombine.high %v926_v20, %v930_v23  ;;  %v3411_v27 = vshrl.u32 %v111_v26, 7  ;;  %v109_v29 = vld [vmem:[%s3485_s2] sm:$0x3]  ;;  %v754_v18 = vld [vmem:[#allocation10 + $0x60] sm:$0xff] }
  0x63   :  { %694 = vmatpush1.bf16.msra.mxu0 %v3120_v30  ;;  %668 = vmatprep.subr.bf16.mxu1 %v3166_v41  ;;  %v794_v41 = vld [vmem:[#allocation10 + $0x1a0] sm:$0xff] }
  0x64   :  { %695 = vmatprep.subr.bf16.mxu0 %v3128_v31  ;;  %v3414_v28 = vsub.s32 0, %v3411_v27  ;;  %v3420_v30 = vsub.s32 1, %v3411_v27  ;;  %v878_v19 = vld [vmem:[#allocation10 + $0x440] sm:$0xff] }
  0x65   :  { %v882_v20 = vld [vmem:[#allocation10 + $0x460] sm:$0xff] }
  0x66   :  { %669 = vmatpush2.bf16.msra.mxu1 %v3171_v44  ;;  %v114_v31 = vrot.slane %v109_v29, %v3414_v28  ;;  %v118_v32 = vrot.slane %v109_v29, %v3420_v30  ;;  %v746_v26 = vld [vmem:[#allocation10 + $0x20] sm:$0xff] }
  0x67   :  { %696 = vmatpush1.bf16.msra.mxu0 %v3126_v34  ;;  %670 = vmatprep.subr.bf16.mxu1 %v3172_v45  ;;  %v870_v29 = vld [vmem:[#allocation10 + $0x400] sm:$0xff] }
  0x68   :  { %697 = vmatprep.subr.bf16.mxu0 %v3134_v35 }
  0x6a   :  { %671 = vmatpush2.bf16.msra.mxu1 %v3177_v47 }
  0x6b   :  { %698 = vmatpush1.bf16.msra.mxu0 %v3132_v38  ;;  %672 = vmatprep.subr.bf16.mxu1 %v3178_v49  ;;  %v782_v49 = vld [vmem:[#allocation10 + $0x140] sm:$0xff] }
  0x6c   :  { %699 = vmatprep.subr.bf16.mxu0 %v3140_v39  ;;  %v790_v39 = vld [vmem:[#allocation10 + $0x180] sm:$0xff] }
  0x6d   :  { %v2869_v47 = vcombine.high %v790_v39, %v794_v41 }
  0x6e   :  { %673 = vmatpush2.bf16.msra.mxu1 %v3183_v51  ;;  %v910_v51 = vld [vmem:[#allocation10 + $0x540] sm:$0xff] }
  0x6f   :  { %700 = vmatpush1.bf16.msra.mxu0 %v3138_v42  ;;  %674 = vmatprep.subr.bf16.mxu1 %v3184_v53  ;;  %v918_v42 = vld [vmem:[#allocation10 + $0x580] sm:$0xff]  ;;  %v2868_v53 = vcombine.low %v790_v39, %v794_v41 }
  0x70   :  { %701 = vmatprep.subr.bf16.mxu0 %v3146_v43  ;;  %v922_v43 = vld [vmem:[#allocation10 + $0x5a0] sm:$0xff] }
  0x71   :  { %v994_v39 = vld [vmem:[#allocation10 + $0x7e0] sm:$0xff] }
  0x72   :  { %675 = vmatpush2.bf16.msra.mxu1 %v3189_v55 }
  0x73   :  { %702 = vmatpush1.bf16.msra.mxu0 %v3144_v46  ;;  %676 = vmatprep.subr.bf16.mxu1 %v3190_v57  ;;  %v774_v57 = vld [vmem:[#allocation10 + $0x100] sm:$0xff] }
  0x74   :  { %703 = vmatprep.subr.bf16.mxu0 %v3152_v48  ;;  %v2997_v48 = vcombine.high %v918_v42, %v922_v43 }
  0x76   :  { %677 = vmatpush2.bf16.msra.mxu1 %v3195_v59  ;;  %v902_v59 = vld [vmem:[#allocation10 + $0x500] sm:$0xff] }
  0x77   :  { %704 = vmatpush1.bf16.msra.mxu0 %v3150_v50  ;;  %678 = vmatprep.subr.bf16.mxu1 %v3196_v61  ;;  %v786_v50 = vld [vmem:[#allocation10 + $0x160] sm:$0xff] }
  0x78   :  { %705 = vmatprep.subr.bf16.mxu0 %v3158_v52  ;;  %v914_v52 = vld [vmem:[#allocation10 + $0x560] sm:$0xff]  ;;  %v2861_v55 = vcombine.high %v782_v49, %v786_v50  ;;  %v2860_v61 = vcombine.low %v782_v49, %v786_v50 }
  0x7a   :  { %679 = vmatpush2.bf16.msra.mxu1 %v3201_v63 }
  0x7b   :  { %706 = vmatpush1.bf16.msra.mxu0 %v3156_v54  ;;  %680 = vmatprep.subr.bf16.mxu1 %v3202_v10  ;;  %v2996_v54 = vcombine.low %v918_v42, %v922_v43  ;;  %v762_v10 = vld [vmem:[#allocation10 + $0xa0] sm:$0xff] }
  0x7c   :  { %707 = vmatprep.subr.bf16.mxu0 %v3164_v56  ;;  %v2989_v56 = vcombine.high %v910_v51, %v914_v52 }
  0x7e   :  { %681 = vmatpush2.bf16.msra.mxu1 %v3207_v13 }
  0x7f   :  { %708 = vmatpush1.bf16.msra.mxu0 %v3162_v58  ;;  %682 = vmatprep.subr.bf16.mxu1 %v3208_v14  ;;  %v778_v58 = vld [vmem:[#allocation10 + $0x120] sm:$0xff] }
  0x80   :  { %709 = vmatprep.subr.bf16.mxu0 %v3170_v60  ;;  %v906_v60 = vld [vmem:[#allocation10 + $0x520] sm:$0xff]  ;;  %v2853_v63 = vcombine.high %v774_v57, %v778_v58 }
  0x82   :  { %683 = vmatpush2.bf16.msra.mxu1 %v3213_v17  ;;  %v750_v17 = vld [vmem:[#allocation10 + $0x40] sm:$0xff] }
  0x83   :  { %710 = vmatpush2.bf16.msra.mxu0 %v3168_v62  ;;  %2320 = vmatprep.subr.bf16.mxu1 %v2877_v22  ;;  %v2988_v62 = vcombine.low %v910_v51, %v914_v52  ;;  %v2829_v23 = vcombine.high %v750_v17, %v754_v18  ;;  %v846_v52 = vld [vmem:[#allocation10 + $0x340] sm:$0xff] }
  0x84   :  { %711 = vmatprep.subr.bf16.mxu0 %v3176_v0  ;;  %v2981_v0 = vcombine.high %v902_v59, %v906_v60 }
  0x87   :  { %712 = vmatpush2.bf16.msra.mxu0 %v3174_v1  ;;  %v766_v1 = vld [vmem:[#allocation10 + $0xc0] sm:$0xff] }
  0x88   :  { %713 = vmatprep.subr.bf16.mxu0 %v3182_v2  ;;  %v770_v2 = vld [vmem:[#allocation10 + $0xe0] sm:$0xff] }
  0x89   :  { %v2844_v13 = vcombine.low %v766_v1, %v770_v2 }
  0x8b   :  { %714 = vmatpush2.bf16.msra.mxu0 %v3180_v3  ;;  %v894_v3 = vld [vmem:[#allocation10 + $0x4c0] sm:$0xff] }
  0x8c   :  { %715 = vmatprep.subr.bf16.mxu0 %v3188_v4  ;;  %v898_v4 = vld [vmem:[#allocation10 + $0x4e0] sm:$0xff] }
  0x8d   :  { %v2972_v14 = vcombine.low %v894_v3, %v898_v4 }
  0x8f   :  { %716 = vmatpush2.bf16.msra.mxu0 %v3186_v5  ;;  %v2852_v5 = vcombine.low %v774_v57, %v778_v58 }
  0x90   :  { %717 = vmatprep.subr.bf16.mxu0 %v3194_v6  ;;  %v2980_v6 = vcombine.low %v902_v59, %v906_v60  ;;  %v838_v60 = vld [vmem:[#allocation10 + $0x300] sm:$0xff] }
  0x93   :  { %718 = vmatpush2.bf16.msra.mxu0 %v3192_v7  ;;  %v2845_v7 = vcombine.high %v766_v1, %v770_v2 }
  0x94   :  { %719 = vmatprep.subr.bf16.mxu0 %v3200_v8  ;;  %v2973_v8 = vcombine.high %v894_v3, %v898_v4  ;;  %v830_v4 = vld [vmem:[#allocation10 + $0x2c0] sm:$0xff] }
  0x97   :  { %720 = vmatpush2.bf16.msra.mxu0 %v3198_v9  ;;  %v758_v9 = vld [vmem:[#allocation10 + $0x80] sm:$0xff] }
  0x98   :  { %721 = vmatprep.subr.bf16.mxu0 %v3206_v11  ;;  %v886_v11 = vld [vmem:[#allocation10 + $0x480] sm:$0xff] }
  0x9b   :  { %722 = vmatpush2.bf16.msra.mxu0 %v3204_v12  ;;  %v890_v12 = vld [vmem:[#allocation10 + $0x4a0] sm:$0xff] }
  0x9c   :  { %723 = vmatprep.subr.bf16.mxu0 %v3212_v15  ;;  %v2837_v15 = vcombine.high %v758_v9, %v762_v10  ;;  %v2964_v22 = vcombine.low %v886_v11, %v890_v12 }
  0x9f   :  { %724 = vmatpush2.bf16.msra.mxu0 %v3210_v16  ;;  %v2965_v16 = vcombine.high %v886_v11, %v890_v12  ;;  %v822_v12 = vld [vmem:[#allocation10 + $0x280] sm:$0xff] }
  0xa0   :  { %2361 = vmatprep.subr.bf16.mxu0 %v3005_v25  ;;  %v742_v25 = vld [vmem:[#allocation10] sm:$0xff] }
 0x122   :  { %v235_v33 = vpop.f32.mrf.mxu0 }
 0x123   :  { %v236_v34 = vadd.f32 %v235_v33, %v114_v31  ;;  %v874_v31 = vld [vmem:[#allocation10 + $0x420] sm:$0xff]  ;;  %v2956_v33 = vcombine.low %v878_v19, %v882_v20 }
 0x124   :  { %v237_v35 = vpop.f32.mrf.mxu0  ;;  %v2948_v41 = vcombine.low %v870_v29, %v874_v31 }
 0x125   :  { %v238_v36 = vadd.f32 %v237_v35, %v118_v32  ;;  %v242_v37 = vmax.f32 %v236_v34, 0.0  ;;  %v2828_v32 = vcombine.low %v750_v17, %v754_v18  ;;  %v2821_v34 = vcombine.high %v742_v25, %v746_v26 }
 0x126   :  { %v239_v38 = vpop.f32.mrf.mxu0  ;;  %v2949_v35 = vcombine.high %v870_v29, %v874_v31 }
 0x127   :  { %v243_v40 = vmax.f32 %v238_v36, 0.0  ;;  %v244_v46 = vpack.c.bf16 %v242_v37, %v242_v37  ;;  %v862_v36 = vld [vmem:[#allocation10 + $0x3c0] sm:$0xff] }
 0x128   :  { %v240_v44 = vpop.f32.mrf.mxu0  ;;  %v866_v37 = vld [vmem:[#allocation10 + $0x3e0] sm:$0xff] }
 0x129   :  { %v245_v45 = vpack.c.bf16 %v243_v40, %v243_v40  ;;  %v990_v38 = vld [vmem:[#allocation10 + $0x7c0] sm:$0xff]  ;;  %v2820_v40 = vcombine.low %v742_v25, %v746_v26  ;;  %v2941_v42 = vcombine.high %v862_v36, %v866_v37 }
 0x12a   :  { %v3069_v43 = vcombine.high %v990_v38, %v994_v39  ;;  %v854_v44 = vld [vmem:[#allocation10 + $0x380] sm:$0xff]  ;;  %v3068_v49 = vcombine.low %v990_v38, %v994_v39 }
 0x12b   :  { %684 = vmatprep.mubr.bf16.mxu1 %v245_v45  ;;  %725 = vmatprep.mubr.bf16.mxu0 %v245_v45  ;;  %v858_v45 = vld [vmem:[#allocation10 + $0x3a0] sm:$0xff] }
 0x12c   :  { %685 = vmatmul.mubr.bf16.vlgmr.msra.gmra.mxu1 %v244_v46  ;;  %726 = vmatmul.mubr.bf16.vlgmr.msra.gmra.mxu0 %v244_v46  ;;  %v982_v46 = vld [vmem:[#allocation10 + $0x780] sm:$0xff]  ;;  %v2933_v50 = vcombine.high %v854_v44, %v858_v45 }
 0x12d   :  { %2321 = vmatpush1.bf16.msra.mxu1 %v2876_v21  ;;  %2362 = vmatpush1.bf16.msra.mxu0 %v3004_v24  ;;  %v2836_v21 = vcombine.low %v758_v9, %v762_v10  ;;  %v2957_v24 = vcombine.high %v878_v19, %v882_v20  ;;  %v946_v26 = vld [vmem:[#allocation10 + $0x660] sm:$0xff] }
 0x12e   :  { %2322 = vmatprep.subr.bf16.mxu1 %v2869_v47  ;;  %2363 = vmatprep.subr.bf16.mxu0 %v2997_v48  ;;  %v986_v47 = vld [vmem:[#allocation10 + $0x7a0] sm:$0xff]  ;;  %v2940_v48 = vcombine.low %v862_v36, %v866_v37 }
 0x12f   :  { %v3061_v51 = vcombine.high %v982_v46, %v986_v47  ;;  %v3060_v57 = vcombine.low %v982_v46, %v986_v47  ;;  %v938_v37 = vld [vmem:[#allocation10 + $0x620] sm:$0xff] }
 0x131   :  { %2323 = vmatpush1.bf16.msra.mxu1 %v2868_v53  ;;  %2364 = vmatpush1.bf16.msra.mxu0 %v2996_v54  ;;  %v850_v53 = vld [vmem:[#allocation10 + $0x360] sm:$0xff] }
 0x132   :  { %2324 = vmatprep.subr.bf16.mxu1 %v2861_v55  ;;  %2365 = vmatprep.subr.bf16.mxu0 %v2989_v56  ;;  %v974_v54 = vld [vmem:[#allocation10 + $0x740] sm:$0xff]  ;;  %v2932_v56 = vcombine.low %v854_v44, %v858_v45  ;;  %v2925_v58 = vcombine.high %v846_v52, %v850_v53  ;;  %v931_v45 = vld [vmem:[#allocation10 + $0x5e8] sm:$0xff] }
 0x133   :  { %v978_v55 = vld [vmem:[#allocation10 + $0x760] sm:$0xff] }
 0x134   :  { %v3053_v59 = vcombine.high %v974_v54, %v978_v55  ;;  %v3052_v1 = vcombine.low %v974_v54, %v978_v55 }
 0x135   :  { %2325 = vmatpush1.bf16.msra.mxu1 %v2860_v61  ;;  %2366 = vmatpush1.bf16.msra.mxu0 %v2988_v62  ;;  %v842_v61 = vld [vmem:[#allocation10 + $0x320] sm:$0xff] }
 0x136   :  { %2326 = vmatprep.subr.bf16.mxu1 %v2853_v63  ;;  %2367 = vmatprep.subr.bf16.mxu0 %v2981_v0  ;;  %v966_v62 = vld [vmem:[#allocation10 + $0x700] sm:$0xff]  ;;  %v2924_v0 = vcombine.low %v846_v52, %v850_v53  ;;  %v2917_v2 = vcombine.high %v838_v60, %v842_v61 }
 0x137   :  { %v970_v63 = vld [vmem:[#allocation10 + $0x720] sm:$0xff] }
 0x138   :  { %v3045_v3 = vcombine.high %v966_v62, %v970_v63  ;;  %v3044_v9 = vcombine.low %v966_v62, %v970_v63 }
 0x139   :  { %2327 = vmatpush1.bf16.msra.mxu1 %v2852_v5  ;;  %2368 = vmatpush1.bf16.msra.mxu0 %v2980_v6  ;;  %v834_v5 = vld [vmem:[#allocation10 + $0x2e0] sm:$0xff] }
 0x13a   :  { %2328 = vmatprep.subr.bf16.mxu1 %v2845_v7  ;;  %2369 = vmatprep.subr.bf16.mxu0 %v2973_v8  ;;  %v958_v6 = vld [vmem:[#allocation10 + $0x6c0] sm:$0xff]  ;;  %v2916_v8 = vcombine.low %v838_v60, %v842_v61  ;;  %v2909_v10 = vcombine.high %v830_v4, %v834_v5 }
 0x13b   :  { %v962_v7 = vld [vmem:[#allocation10 + $0x6e0] sm:$0xff] }
 0x13c   :  { %v3037_v11 = vcombine.high %v958_v6, %v962_v7  ;;  %v3036_v17 = vcombine.low %v958_v6, %v962_v7  ;;  %v791_v6 = vld [vmem:[#allocation10 + $0x188] sm:$0xff] }
 0x13d   :  { %2329 = vmatpush1.bf16.msra.mxu1 %v2844_v13  ;;  %2370 = vmatpush1.bf16.msra.mxu0 %v2972_v14  ;;  %v826_v13 = vld [vmem:[#allocation10 + $0x2a0] sm:$0xff] }
 0x13e   :  { %2330 = vmatprep.subr.bf16.mxu1 %v2837_v15  ;;  %2371 = vmatprep.subr.bf16.mxu0 %v2965_v16  ;;  %v950_v14 = vld [vmem:[#allocation10 + $0x680] sm:$0xff]  ;;  %v2908_v16 = vcombine.low %v830_v4, %v834_v5  ;;  %v2901_v18 = vcombine.high %v822_v12, %v826_v13  ;;  %v2900_v20 = vcombine.low %v822_v12, %v826_v13 }
 0x13f   :  { %v954_v15 = vld [vmem:[#allocation10 + $0x6a0] sm:$0xff] }
 0x140   :  { %v3029_v19 = vcombine.high %v950_v14, %v954_v15 }
 0x141   :  { %2331 = vmatpush1.bf16.msra.mxu1 %v2836_v21  ;;  %2372 = vmatpush1.bf16.msra.mxu0 %v2964_v22  ;;  %v3028_v21 = vcombine.low %v950_v14, %v954_v15  ;;  %v814_v22 = vld [vmem:[#allocation10 + $0x240] sm:$0xff] }
 0x142   :  { %2332 = vmatprep.subr.bf16.mxu1 %v2829_v23  ;;  %2373 = vmatprep.subr.bf16.mxu0 %v2957_v24  ;;  %v818_v23 = vld [vmem:[#allocation10 + $0x260] sm:$0xff] }
 0x143   :  { %v942_v24 = vld [vmem:[#allocation10 + $0x640] sm:$0xff]  ;;  %v2893_v25 = vcombine.high %v814_v22, %v818_v23  ;;  %v2892_v29 = vcombine.low %v814_v22, %v818_v23 }
 0x144   :  { %v3020_v31 = vcombine.low %v942_v24, %v946_v26 }
 0x145   :  { %2333 = vmatpush1.bf16.msra.mxu1 %v2828_v32  ;;  %2374 = vmatpush1.bf16.msra.mxu0 %v2956_v33  ;;  %v3021_v32 = vcombine.high %v942_v24, %v946_v26  ;;  %v806_v33 = vld [vmem:[#allocation10 + $0x200] sm:$0xff]  ;;  %v775_v26 = vld [vmem:[#allocation10 + $0x108] sm:$0xff] }
 0x146   :  { %2334 = vmatprep.subr.bf16.mxu1 %v2821_v34  ;;  %2375 = vmatprep.subr.bf16.mxu0 %v2949_v35  ;;  %v810_v34 = vld [vmem:[#allocation10 + $0x220] sm:$0xff] }
 0x147   :  { %v934_v35 = vld [vmem:[#allocation10 + $0x600] sm:$0xff]  ;;  %v2885_v36 = vcombine.high %v806_v33, %v810_v34  ;;  %v2884_v38 = vcombine.low %v806_v33, %v810_v34 }
 0x148   :  { %v3012_v39 = vcombine.low %v934_v35, %v938_v37 }
 0x149   :  { %2335 = vmatpush1.bf16.msra.mxu1 %v2820_v40  ;;  %2376 = vmatpush1.bf16.msra.mxu0 %v2948_v41  ;;  %v3013_v40 = vcombine.high %v934_v35, %v938_v37  ;;  %v799_v41 = vld [vmem:[#allocation10 + $0x1c8] sm:$0xff] }
 0x14a   :  { %2336 = vmatprep.subr.bf16.mxu1 %v2941_v42  ;;  %2377 = vmatprep.subr.bf16.mxu0 %v3069_v43  ;;  %v803_v42 = vld [vmem:[#allocation10 + $0x1e8] sm:$0xff] }
 0x14b   :  { %v927_v43 = vld [vmem:[#allocation10 + $0x5c8] sm:$0xff]  ;;  %v2879_v44 = vcombine.high %v799_v41, %v803_v42  ;;  %v2878_v46 = vcombine.low %v799_v41, %v803_v42 }
 0x14c   :  { %v3006_v47 = vcombine.low %v927_v43, %v931_v45  ;;  %v767_v37 = vld [vmem:[#allocation10 + $0xc8] sm:$0xff] }
 0x14d   :  { %2337 = vmatpush2.bf16.msra.mxu1 %v2940_v48  ;;  %2378 = vmatpush2.bf16.msra.mxu0 %v3068_v49  ;;  %v3007_v48 = vcombine.high %v927_v43, %v931_v45  ;;  %v322_v49 = vsub.s32 2, %v3411_v27  ;;  %v759_v45 = vld [vmem:[#allocation10 + $0x88] sm:$0xff] }
 0x14e   :  { %2338 = vmatprep.subr.bf16.mxu1 %v2933_v50  ;;  %2379 = vmatprep.subr.bf16.mxu0 %v3061_v51  ;;  %v310_v50 = vld [vmem:[#allocation8] sm:$0xf]  ;;  %v326_v51 = vsub.s32 3, %v3411_v27 }
 0x14f   :  { %v315_v52 = vrot.slane %v310_v50, %v3414_v28  ;;  %v323_v53 = vrot.slane %v310_v50, %v322_v49  ;;  %v319_v54 = vrot.slane %v310_v50, %v3420_v30 }
 0x150   :  { %v327_v55 = vrot.slane %v310_v50, %v326_v51 }
 0x151   :  { %2339 = vmatpush2.bf16.msra.mxu1 %v2932_v56  ;;  %2380 = vmatpush2.bf16.msra.mxu0 %v3060_v57 }
 0x152   :  { %2340 = vmatprep.subr.bf16.mxu1 %v2925_v58  ;;  %2381 = vmatprep.subr.bf16.mxu0 %v3053_v59 }
 0x155   :  { %2341 = vmatpush2.bf16.msra.mxu1 %v2924_v0  ;;  %2382 = vmatpush2.bf16.msra.mxu0 %v3052_v1 }
 0x156   :  { %2342 = vmatprep.subr.bf16.mxu1 %v2917_v2  ;;  %2383 = vmatprep.subr.bf16.mxu0 %v3045_v3 }
 0x159   :  { %2343 = vmatpush2.bf16.msra.mxu1 %v2916_v8  ;;  %2384 = vmatpush2.bf16.msra.mxu0 %v3044_v9  ;;  %v795_v9 = vld [vmem:[#allocation10 + $0x1a8] sm:$0xff] }
 0x15a   :  { %2344 = vmatprep.subr.bf16.mxu1 %v2909_v10  ;;  %2385 = vmatprep.subr.bf16.mxu0 %v3037_v11  ;;  %v919_v10 = vld [vmem:[#allocation10 + $0x588] sm:$0xff]  ;;  %v2870_v22 = vcombine.low %v791_v6, %v795_v9 }
 0x15b   :  { %v923_v11 = vld [vmem:[#allocation10 + $0x5a8] sm:$0xff] }
 0x15c   :  { %v2998_v23 = vcombine.low %v919_v10, %v923_v11 }
 0x15d   :  { %2345 = vmatpush2.bf16.msra.mxu1 %v2908_v16  ;;  %2386 = vmatpush2.bf16.msra.mxu0 %v3036_v17  ;;  %v783_v16 = vld [vmem:[#allocation10 + $0x148] sm:$0xff]  ;;  %v2871_v17 = vcombine.high %v791_v6, %v795_v9 }
 0x15e   :  { %2346 = vmatprep.subr.bf16.mxu1 %v2901_v18  ;;  %2387 = vmatprep.subr.bf16.mxu0 %v3029_v19  ;;  %v2999_v18 = vcombine.high %v919_v10, %v923_v11  ;;  %v787_v19 = vld [vmem:[#allocation10 + $0x168] sm:$0xff] }
 0x15f   :  { %v2863_v24 = vcombine.high %v783_v16, %v787_v19  ;;  %v2862_v33 = vcombine.low %v783_v16, %v787_v19  ;;  %v991_v9 = vld [vmem:[#allocation10 + $0x7c8] sm:$0xff] }
 0x160   :  { %v995_v10 = vld [vmem:[#allocation10 + $0x7e8] sm:$0xff] }
 0x161   :  { %2347 = vmatpush2.bf16.msra.mxu1 %v2900_v20  ;;  %2388 = vmatpush2.bf16.msra.mxu0 %v3028_v21  ;;  %v911_v20 = vld [vmem:[#allocation10 + $0x548] sm:$0xff] }
 0x162   :  { %2348 = vmatprep.subr.bf16.mxu1 %v2893_v25  ;;  %2389 = vmatprep.subr.bf16.mxu0 %v3021_v32  ;;  %v915_v21 = vld [vmem:[#allocation10 + $0x568] sm:$0xff] }
 0x163   :  { %v2991_v25 = vcombine.high %v911_v20, %v915_v21  ;;  %v907_v32 = vld [vmem:[#allocation10 + $0x528] sm:$0xff]  ;;  %v2990_v34 = vcombine.low %v911_v20, %v915_v21 }
 0x164   :  { %v855_v19 = vld [vmem:[#allocation10 + $0x388] sm:$0xff] }
 0x165   :  { %2349 = vmatpush2.bf16.msra.mxu1 %v2892_v29  ;;  %2390 = vmatpush2.bf16.msra.mxu0 %v3020_v31  ;;  %v779_v29 = vld [vmem:[#allocation10 + $0x128] sm:$0xff] }
 0x166   :  { %2350 = vmatprep.subr.bf16.mxu1 %v2885_v36  ;;  %2391 = vmatprep.subr.bf16.mxu0 %v3013_v40  ;;  %v903_v31 = vld [vmem:[#allocation10 + $0x508] sm:$0xff]  ;;  %v2855_v35 = vcombine.high %v775_v26, %v779_v29  ;;  %v2854_v41 = vcombine.low %v775_v26, %v779_v29 }
 0x167   :  { %v2983_v36 = vcombine.high %v903_v31, %v907_v32  ;;  %v899_v40 = vld [vmem:[#allocation10 + $0x4e8] sm:$0xff]  ;;  %v2982_v42 = vcombine.low %v903_v31, %v907_v32 }
 0x168   :  { %v859_v20 = vld [vmem:[#allocation10 + $0x3a8] sm:$0xff] }
 0x169   :  { %2351 = vmatpush2.bf16.msra.mxu1 %v2884_v38  ;;  %2392 = vmatpush2.bf16.msra.mxu0 %v3012_v39  ;;  %v771_v38 = vld [vmem:[#allocation10 + $0xe8] sm:$0xff] }
 0x16a   :  { %2402 = vmatprep.subr.bf16.mxu1 %v2879_v44  ;;  %2443 = vmatprep.subr.bf16.mxu0 %v3007_v48  ;;  %v895_v39 = vld [vmem:[#allocation10 + $0x4c8] sm:$0xff]  ;;  %v2847_v43 = vcombine.high %v767_v37, %v771_v38  ;;  %v2846_v50 = vcombine.low %v767_v37, %v771_v38 }
 0x16b   :  { %v2975_v44 = vcombine.high %v895_v39, %v899_v40  ;;  %v891_v48 = vld [vmem:[#allocation10 + $0x4a8] sm:$0xff] }
 0x16c   :  { %v983_v21 = vld [vmem:[#allocation10 + $0x788] sm:$0xff] }
 0x16d   :  { %v847_v29 = vld [vmem:[#allocation10 + $0x348] sm:$0xff] }
 0x16e   :  { %v851_v31 = vld [vmem:[#allocation10 + $0x368] sm:$0xff] }
 0x16f   :  { %v975_v32 = vld [vmem:[#allocation10 + $0x748] sm:$0xff] }
 0x170   :  { %v839_v38 = vld [vmem:[#allocation10 + $0x308] sm:$0xff] }
 0x1ec   :  { %v686_v56 = vpop.f32.mrf.mxu1  ;;  %v727_v57 = vpop.f32.mrf.mxu0 }
 0x1ed   :  { %v687_v58 = vadd.f32 %v686_v56, %v315_v52  ;;  %v728_v59 = vadd.f32 %v727_v57, %v323_v53  ;;  %v2974_v52 = vcombine.low %v895_v39, %v899_v40  ;;  %v755_v56 = vld [vmem:[#allocation10 + $0x68] sm:$0xff] }
 0x1ee   :  { %v688_v60 = vpop.f32.mrf.mxu1  ;;  %v729_v61 = vpop.f32.mrf.mxu0  ;;  %v879_v57 = vld [vmem:[#allocation10 + $0x448] sm:$0xff] }
 0x1ef   :  { %v689_v62 = vadd.f32 %v688_v60, %v319_v54  ;;  %v730_v63 = vadd.f32 %v729_v61, %v327_v55  ;;  %v734_v0 = vmax.f32 %v687_v58, 0.0  ;;  %v736_v1 = vmax.f32 %v728_v59, 0.0  ;;  %v751_v55 = vld [vmem:[#allocation10 + $0x48] sm:$0xff] }
 0x1f0   :  { %v690_v2 = vpop.f32.mrf.mxu1  ;;  %v731_v3 = vpop.f32.mrf.mxu0  ;;  %v883_v58 = vld [vmem:[#allocation10 + $0x468] sm:$0xff]  ;;  %v2831_v61 = vcombine.high %v751_v55, %v755_v56 }
 0x1f1   :  { %v735_v4 = vmax.f32 %v689_v62, 0.0  ;;  %v737_v5 = vmax.f32 %v730_v63, 0.0  ;;  %v3436_v14 = vpack.c.bf16 %v734_v0, %v734_v0  ;;  %v3438_v15 = vpack.c.bf16 %v736_v1, %v736_v1  ;;  %v743_v63 = vld [vmem:[#allocation10 + $0x8] sm:$0xff] }
 0x1f2   :  { %v691_v7 = vpop.f32.mrf.mxu1  ;;  %v732_v8 = vpop.f32.mrf.mxu0  ;;  %v2959_v62 = vcombine.high %v879_v57, %v883_v58  ;;  %v747_v0 = vld [vmem:[#allocation10 + $0x28] sm:$0xff]  ;;  %v2830_v3 = vcombine.low %v751_v55, %v755_v56 }
 0x1f3   :  { %v3432_v12 = vpack.c.bf16 %v735_v4, %v735_v4  ;;  %v3434_v13 = vpack.c.bf16 %v737_v5, %v737_v5  ;;  %v871_v1 = vld [vmem:[#allocation10 + $0x408] sm:$0xff]  ;;  %v2958_v4 = vcombine.low %v879_v57, %v883_v58  ;;  %v2823_v5 = vcombine.high %v743_v63, %v747_v0 }
 0x1f4   :  { %v875_v2 = vld [vmem:[#allocation10 + $0x428] sm:$0xff]  ;;  %v2822_v11 = vcombine.low %v743_v63, %v747_v0 }
 0x1f5   :  { %2352 = vmatprep.mubr.bf16.mxu1 %v3432_v12  ;;  %2393 = vmatprep.mubr.bf16.mxu0 %v3434_v13  ;;  %v2951_v6 = vcombine.high %v871_v1, %v875_v2  ;;  %v863_v7 = vld [vmem:[#allocation10 + $0x3c8] sm:$0xff]  ;;  %v2950_v16 = vcombine.low %v871_v1, %v875_v2 }
 0x1f6   :  { %2353 = vmatmul.mubr.bf16.vlgmr.msra.gmra.mxu1 %v3436_v14  ;;  %2394 = vmatmul.mubr.bf16.vlgmr.msra.gmra.mxu0 %v3438_v15  ;;  %v867_v8 = vld [vmem:[#allocation10 + $0x3e8] sm:$0xff] }
 0x1f7   :  { %2403 = vmatpush1.bf16.msra.mxu1 %v2878_v46  ;;  %2444 = vmatpush1.bf16.msra.mxu0 %v3006_v47  ;;  %v763_v46 = vld [vmem:[#allocation10 + $0xa8] sm:$0xff] }
 0x1f8   :  { %2434 = vmatprep.mubr.bf16.mxu1 %v3432_v12  ;;  %2475 = vmatprep.mubr.bf16.mxu0 %v3434_v13  ;;  %v887_v47 = vld [vmem:[#allocation10 + $0x488] sm:$0xff]  ;;  %v2839_v53 = vcombine.high %v759_v45, %v763_v46  ;;  %v2838_v59 = vcombine.low %v759_v45, %v763_v46 }
 0x1f9   :  { %2404 = vmatprep.subr.bf16.mxu1 %v2871_v17  ;;  %2445 = vmatprep.subr.bf16.mxu0 %v2999_v18  ;;  %v2967_v54 = vcombine.high %v887_v47, %v891_v48  ;;  %v2966_v60 = vcombine.low %v887_v47, %v891_v48  ;;  %v2943_v17 = vcombine.high %v863_v7, %v867_v8  ;;  %v843_v39 = vld [vmem:[#allocation10 + $0x328] sm:$0xff] }
 0x1fa   :  { %v3071_v18 = vcombine.high %v991_v9, %v995_v10  ;;  %v967_v40 = vld [vmem:[#allocation10 + $0x708] sm:$0xff] }
 0x1fb   :  { %2405 = vmatpush1.bf16.msra.mxu1 %v2870_v22  ;;  %2446 = vmatpush1.bf16.msra.mxu0 %v2998_v23  ;;  %v987_v22 = vld [vmem:[#allocation10 + $0x7a8] sm:$0xff]  ;;  %v2942_v23 = vcombine.low %v863_v7, %v867_v8 }
 0x1fc   :  { %2406 = vmatprep.subr.bf16.mxu1 %v2863_v24  ;;  %2447 = vmatprep.subr.bf16.mxu0 %v2991_v25  ;;  %v3070_v24 = vcombine.low %v991_v9, %v995_v10  ;;  %v2935_v25 = vcombine.high %v855_v19, %v859_v20  ;;  %v3063_v26 = vcombine.high %v983_v21, %v987_v22  ;;  %v831_v46 = vld [vmem:[#allocation10 + $0x2c8] sm:$0xff] }
 0x1fd   :  { %v835_v47 = vld [vmem:[#allocation10 + $0x2e8] sm:$0xff] }
 0x1fe   :  { %v959_v48 = vld [vmem:[#allocation10 + $0x6c8] sm:$0xff] }
 0x1ff   :  { %2407 = vmatpush1.bf16.msra.mxu1 %v2862_v33  ;;  %2448 = vmatpush1.bf16.msra.mxu0 %v2990_v34  ;;  %v979_v33 = vld [vmem:[#allocation10 + $0x768] sm:$0xff]  ;;  %v2934_v34 = vcombine.low %v855_v19, %v859_v20  ;;  %v800_v20 = vld [vmem:[#allocation10 + $0x1d0] sm:$0xff] }
 0x200   :  { %2408 = vmatprep.subr.bf16.mxu1 %v2855_v35  ;;  %2449 = vmatprep.subr.bf16.mxu0 %v2983_v36  ;;  %v3062_v35 = vcombine.low %v983_v21, %v987_v22  ;;  %v2927_v36 = vcombine.high %v847_v29, %v851_v31  ;;  %v3055_v37 = vcombine.high %v975_v32, %v979_v33  ;;  %v823_v56 = vld [vmem:[#allocation10 + $0x288] sm:$0xff]  ;;  %v804_v21 = vld [vmem:[#allocation10 + $0x1f0] sm:$0xff] }
 0x201   :  { %v827_v57 = vld [vmem:[#allocation10 + $0x2a8] sm:$0xff]  ;;  %v928_v22 = vld [vmem:[#allocation10 + $0x5d0] sm:$0xff] }
 0x202   :  { %v951_v58 = vld [vmem:[#allocation10 + $0x688] sm:$0xff] }
 0x203   :  { %2409 = vmatpush1.bf16.msra.mxu1 %v2854_v41  ;;  %2450 = vmatpush1.bf16.msra.mxu0 %v2982_v42  ;;  %v971_v41 = vld [vmem:[#allocation10 + $0x728] sm:$0xff]  ;;  %v2926_v42 = vcombine.low %v847_v29, %v851_v31  ;;  %v792_v31 = vld [vmem:[#allocation10 + $0x190] sm:$0xff] }
 0x204   :  { %2410 = vmatprep.subr.bf16.mxu1 %v2847_v43  ;;  %2451 = vmatprep.subr.bf16.mxu0 %v2975_v44  ;;  %v3054_v43 = vcombine.low %v975_v32, %v979_v33  ;;  %v2919_v44 = vcombine.high %v839_v38, %v843_v39  ;;  %v3047_v45 = vcombine.high %v967_v40, %v971_v41  ;;  %v815_v0 = vld [vmem:[#allocation10 + $0x248] sm:$0xff]  ;;  %v796_v32 = vld [vmem:[#allocation10 + $0x1b0] sm:$0xff] }
 0x205   :  { %v819_v1 = vld [vmem:[#allocation10 + $0x268] sm:$0xff]  ;;  %v920_v33 = vld [vmem:[#allocation10 + $0x590] sm:$0xff] }
 0x206   :  { %v943_v2 = vld [vmem:[#allocation10 + $0x648] sm:$0xff] }
 0x207   :  { %2411 = vmatpush1.bf16.msra.mxu1 %v2846_v50  ;;  %2452 = vmatpush1.bf16.msra.mxu0 %v2974_v52  ;;  %v963_v50 = vld [vmem:[#allocation10 + $0x6e8] sm:$0xff]  ;;  %v2918_v52 = vcombine.low %v839_v38, %v843_v39  ;;  %v784_v39 = vld [vmem:[#allocation10 + $0x150] sm:$0xff] }
 0x208   :  { %2412 = vmatprep.subr.bf16.mxu1 %v2839_v53  ;;  %2453 = vmatprep.subr.bf16.mxu0 %v2967_v54  ;;  %v3046_v53 = vcombine.low %v967_v40, %v971_v41  ;;  %v2911_v54 = vcombine.high %v831_v46, %v835_v47  ;;  %v3039_v55 = vcombine.high %v959_v48, %v963_v50  ;;  %v807_v8 = vld [vmem:[#allocation10 + $0x208] sm:$0xff]  ;;  %v788_v40 = vld [vmem:[#allocation10 + $0x170] sm:$0xff] }
 0x209   :  { %v811_v9 = vld [vmem:[#allocation10 + $0x228] sm:$0xff]  ;;  %v912_v41 = vld [vmem:[#allocation10 + $0x550] sm:$0xff] }
 0x20a   :  { %v935_v10 = vld [vmem:[#allocation10 + $0x608] sm:$0xff] }
 0x20b   :  { %2413 = vmatpush1.bf16.msra.mxu1 %v2838_v59  ;;  %2454 = vmatpush1.bf16.msra.mxu0 %v2966_v60  ;;  %v955_v59 = vld [vmem:[#allocation10 + $0x6a8] sm:$0xff]  ;;  %v2910_v60 = vcombine.low %v831_v46, %v835_v47  ;;  %v776_v47 = vld [vmem:[#allocation10 + $0x110] sm:$0xff] }
 0x20c   :  { %2414 = vmatprep.subr.bf16.mxu1 %v2831_v61  ;;  %2455 = vmatprep.subr.bf16.mxu0 %v2959_v62  ;;  %v3038_v61 = vcombine.low %v959_v48, %v963_v50  ;;  %v2903_v62 = vcombine.high %v823_v56, %v827_v57  ;;  %v3031_v63 = vcombine.high %v951_v58, %v955_v59  ;;  %v780_v48 = vld [vmem:[#allocation10 + $0x130] sm:$0xff] }
 0x20d   :  { %v904_v50 = vld [vmem:[#allocation10 + $0x510] sm:$0xff] }
 0x20f   :  { %2415 = vmatpush1.bf16.msra.mxu1 %v2830_v3  ;;  %2456 = vmatpush1.bf16.msra.mxu0 %v2958_v4  ;;  %v947_v3 = vld [vmem:[#allocation10 + $0x668] sm:$0xff]  ;;  %v2902_v4 = vcombine.low %v823_v56, %v827_v57  ;;  %v768_v57 = vld [vmem:[#allocation10 + $0xd0] sm:$0xff] }
 0x210   :  { %2416 = vmatprep.subr.bf16.mxu1 %v2823_v5  ;;  %2457 = vmatprep.subr.bf16.mxu0 %v2951_v6  ;;  %v3030_v5 = vcombine.low %v951_v58, %v955_v59  ;;  %v2895_v6 = vcombine.high %v815_v0, %v819_v1  ;;  %v3023_v7 = vcombine.high %v943_v2, %v947_v3  ;;  %v772_v58 = vld [vmem:[#allocation10 + $0xf0] sm:$0xff] }
 0x211   :  { %v896_v59 = vld [vmem:[#allocation10 + $0x4d0] sm:$0xff] }
 0x213   :  { %2417 = vmatpush1.bf16.msra.mxu1 %v2822_v11  ;;  %2458 = vmatpush1.bf16.msra.mxu0 %v2950_v16  ;;  %v939_v11 = vld [vmem:[#allocation10 + $0x628] sm:$0xff]  ;;  %v2894_v16 = vcombine.low %v815_v0, %v819_v1  ;;  %v760_v1 = vld [vmem:[#allocation10 + $0x90] sm:$0xff] }
 0x214   :  { %2418 = vmatprep.subr.bf16.mxu1 %v2943_v17  ;;  %2459 = vmatprep.subr.bf16.mxu0 %v3071_v18  ;;  %v3022_v17 = vcombine.low %v943_v2, %v947_v3  ;;  %v2887_v18 = vcombine.high %v807_v8, %v811_v9  ;;  %v3015_v19 = vcombine.high %v935_v10, %v939_v11  ;;  %v764_v2 = vld [vmem:[#allocation10 + $0xb0] sm:$0xff] }
 0x215   :  { %v888_v3 = vld [vmem:[#allocation10 + $0x490] sm:$0xff] }
 0x217   :  { %2419 = vmatpush2.bf16.msra.mxu1 %v2942_v23  ;;  %2460 = vmatpush2.bf16.msra.mxu0 %v3070_v24  ;;  %v932_v23 = vld [vmem:[#allocation10 + $0x5f0] sm:$0xff]  ;;  %v2886_v24 = vcombine.low %v807_v8, %v811_v9 }
 0x218   :  { %2420 = vmatprep.subr.bf16.mxu1 %v2935_v25  ;;  %2461 = vmatprep.subr.bf16.mxu0 %v3063_v26  ;;  %v3014_v25 = vcombine.low %v935_v10, %v939_v11  ;;  %v2881_v26 = vcombine.high %v800_v20, %v804_v21  ;;  %v3009_v29 = vcombine.high %v928_v22, %v932_v23  ;;  %v752_v9 = vld [vmem:[#allocation10 + $0x50] sm:$0xff] }
 0x219   :  { %v756_v10 = vld [vmem:[#allocation10 + $0x70] sm:$0xff] }
 0x21a   :  { %v880_v11 = vld [vmem:[#allocation10 + $0x450] sm:$0xff] }
 0x21b   :  { %2421 = vmatpush2.bf16.msra.mxu1 %v2934_v34  ;;  %2462 = vmatpush2.bf16.msra.mxu0 %v3062_v35  ;;  %v924_v34 = vld [vmem:[#allocation10 + $0x5b0] sm:$0xff]  ;;  %v2880_v35 = vcombine.low %v800_v20, %v804_v21 }
 0x21c   :  { %2422 = vmatprep.subr.bf16.mxu1 %v2927_v36  ;;  %2463 = vmatprep.subr.bf16.mxu0 %v3055_v37  ;;  %v3008_v36 = vcombine.low %v928_v22, %v932_v23  ;;  %v2873_v37 = vcombine.high %v792_v31, %v796_v32  ;;  %v3001_v38 = vcombine.high %v920_v33, %v924_v34  ;;  %v744_v21 = vld [vmem:[#allocation10 + $0x10] sm:$0xff] }
 0x21d   :  { %v748_v22 = vld [vmem:[#allocation10 + $0x30] sm:$0xff] }
 0x21e   :  { %v872_v23 = vld [vmem:[#allocation10 + $0x410] sm:$0xff] }
 0x21f   :  { %2423 = vmatpush2.bf16.msra.mxu1 %v2926_v42  ;;  %2464 = vmatpush2.bf16.msra.mxu0 %v3054_v43  ;;  %v916_v42 = vld [vmem:[#allocation10 + $0x570] sm:$0xff]  ;;  %v2872_v43 = vcombine.low %v792_v31, %v796_v32 }
 0x220   :  { %2424 = vmatprep.subr.bf16.mxu1 %v2919_v44  ;;  %2465 = vmatprep.subr.bf16.mxu0 %v3047_v45  ;;  %v3000_v44 = vcombine.low %v920_v33, %v924_v34  ;;  %v2865_v45 = vcombine.high %v784_v39, %v788_v40  ;;  %v2993_v46 = vcombine.high %v912_v41, %v916_v42  ;;  %v864_v32 = vld [vmem:[#allocation10 + $0x3d0] sm:$0xff] }
 0x221   :  { %v868_v33 = vld [vmem:[#allocation10 + $0x3f0] sm:$0xff] }
 0x222   :  { %v992_v34 = vld [vmem:[#allocation10 + $0x7d0] sm:$0xff] }
 0x223   :  { %2425 = vmatpush2.bf16.msra.mxu1 %v2918_v52  ;;  %2466 = vmatpush2.bf16.msra.mxu0 %v3046_v53  ;;  %v908_v52 = vld [vmem:[#allocation10 + $0x530] sm:$0xff]  ;;  %v2864_v53 = vcombine.low %v784_v39, %v788_v40 }
 0x224   :  { %2426 = vmatprep.subr.bf16.mxu1 %v2911_v54  ;;  %2467 = vmatprep.subr.bf16.mxu0 %v3039_v55  ;;  %v2992_v54 = vcombine.low %v912_v41, %v916_v42  ;;  %v2857_v55 = vcombine.high %v776_v47, %v780_v48  ;;  %v2985_v56 = vcombine.high %v904_v50, %v908_v52  ;;  %v856_v40 = vld [vmem:[#allocation10 + $0x390] sm:$0xff] }
 0x225   :  { %v860_v41 = vld [vmem:[#allocation10 + $0x3b0] sm:$0xff] }
 0x226   :  { %v984_v42 = vld [vmem:[#allocation10 + $0x790] sm:$0xff] }
 0x227   :  { %2427 = vmatpush2.bf16.msra.mxu1 %v2910_v60  ;;  %2468 = vmatpush2.bf16.msra.mxu0 %v3038_v61  ;;  %v900_v60 = vld [vmem:[#allocation10 + $0x4f0] sm:$0xff]  ;;  %v2856_v61 = vcombine.low %v776_v47, %v780_v48 }
 0x228   :  { %2428 = vmatprep.subr.bf16.mxu1 %v2903_v62  ;;  %2469 = vmatprep.subr.bf16.mxu0 %v3031_v63  ;;  %v2984_v62 = vcombine.low %v904_v50, %v908_v52  ;;  %v2849_v63 = vcombine.high %v768_v57, %v772_v58  ;;  %v2977_v0 = vcombine.high %v896_v59, %v900_v60  ;;  %v848_v48 = vld [vmem:[#allocation10 + $0x350] sm:$0xff] }
 0x229   :  { %v852_v50 = vld [vmem:[#allocation10 + $0x370] sm:$0xff] }
 0x22a   :  { %v976_v52 = vld [vmem:[#allocation10 + $0x750] sm:$0xff] }
 0x22b   :  { %2429 = vmatpush2.bf16.msra.mxu1 %v2902_v4  ;;  %2470 = vmatpush2.bf16.msra.mxu0 %v3030_v5  ;;  %v892_v4 = vld [vmem:[#allocation10 + $0x4b0] sm:$0xff]  ;;  %v2848_v5 = vcombine.low %v768_v57, %v772_v58 }
 0x22c   :  { %2430 = vmatprep.subr.bf16.mxu1 %v2895_v6  ;;  %2471 = vmatprep.subr.bf16.mxu0 %v3023_v7  ;;  %v2976_v6 = vcombine.low %v896_v59, %v900_v60  ;;  %v2841_v7 = vcombine.high %v760_v1, %v764_v2  ;;  %v2969_v8 = vcombine.high %v888_v3, %v892_v4  ;;  %v840_v58 = vld [vmem:[#allocation10 + $0x310] sm:$0xff] }
 0x22d   :  { %v844_v59 = vld [vmem:[#allocation10 + $0x330] sm:$0xff] }
 0x22e   :  { %v968_v60 = vld [vmem:[#allocation10 + $0x710] sm:$0xff] }
 0x22f   :  { %2431 = vmatpush2.bf16.msra.mxu1 %v2894_v16  ;;  %2472 = vmatpush2.bf16.msra.mxu0 %v3022_v17  ;;  %v884_v16 = vld [vmem:[#allocation10 + $0x470] sm:$0xff]  ;;  %v2840_v17 = vcombine.low %v760_v1, %v764_v2 }
 0x230   :  { %2432 = vmatprep.subr.bf16.mxu1 %v2887_v18  ;;  %2473 = vmatprep.subr.bf16.mxu0 %v3015_v19  ;;  %v2968_v18 = vcombine.low %v888_v3, %v892_v4  ;;  %v2833_v19 = vcombine.high %v752_v9, %v756_v10  ;;  %v2961_v20 = vcombine.high %v880_v11, %v884_v16  ;;  %v832_v2 = vld [vmem:[#allocation10 + $0x2d0] sm:$0xff] }
 0x231   :  { %v836_v3 = vld [vmem:[#allocation10 + $0x2f0] sm:$0xff] }
 0x232   :  { %v960_v4 = vld [vmem:[#allocation10 + $0x6d0] sm:$0xff] }
 0x233   :  { %2433 = vmatpush2.bf16.msra.mxu1 %v2886_v24  ;;  %2474 = vmatpush2.bf16.msra.mxu0 %v3014_v25  ;;  %v876_v24 = vld [vmem:[#allocation10 + $0x430] sm:$0xff]  ;;  %v2832_v25 = vcombine.low %v752_v9, %v756_v10 }
 0x234   :  { %2484 = vmatprep.subr.bf16.mxu1 %v2881_v26  ;;  %2525 = vmatprep.subr.bf16.mxu0 %v3009_v29  ;;  %v2960_v26 = vcombine.low %v880_v11, %v884_v16  ;;  %v2825_v29 = vcombine.high %v744_v21, %v748_v22  ;;  %v2953_v31 = vcombine.high %v872_v23, %v876_v24  ;;  %v824_v10 = vld [vmem:[#allocation10 + $0x290] sm:$0xff] }
 0x235   :  { %v828_v11 = vld [vmem:[#allocation10 + $0x2b0] sm:$0xff] }
 0x236   :  { %2435 = vmatmul.mubr.bf16.vlgmr.msra.gmra.mxu1 %v3436_v14  ;;  %2476 = vmatmul.mubr.bf16.vlgmr.msra.gmra.mxu0 %v3438_v15  ;;  %v952_v16 = vld [vmem:[#allocation10 + $0x690] sm:$0xff] }
 0x237   :  { %2485 = vmatpush1.bf16.msra.mxu1 %v2880_v35  ;;  %2516 = vmatprep.mubr.bf16.mxu1 %v3432_v12  ;;  %v996_v35 = vld [vmem:[#allocation10 + $0x7f0] sm:$0xff] }
 0x238   :  { %2526 = vmatpush1.bf16.msra.mxu0 %v3008_v36  ;;  %2557 = vmatprep.mubr.bf16.mxu0 %v3434_v13  ;;  %v2824_v36 = vcombine.low %v744_v21, %v748_v22  ;;  %v3073_v39 = vcombine.high %v992_v34, %v996_v35  ;;  %v816_v22 = vld [vmem:[#allocation10 + $0x250] sm:$0xff] }
 0x239   :  { %2486 = vmatprep.subr.bf16.mxu1 %v2873_v37  ;;  %2527 = vmatprep.subr.bf16.mxu0 %v3001_v38  ;;  %v2952_v37 = vcombine.low %v872_v23, %v876_v24  ;;  %v2945_v38 = vcombine.high %v864_v32, %v868_v33  ;;  %v820_v23 = vld [vmem:[#allocation10 + $0x270] sm:$0xff] }
 0x23a   :  { %v944_v24 = vld [vmem:[#allocation10 + $0x650] sm:$0xff] }
 0x23b   :  { %2487 = vmatpush1.bf16.msra.mxu1 %v2872_v43  ;;  %v988_v43 = vld [vmem:[#allocation10 + $0x7b0] sm:$0xff] }
 0x23c   :  { %2528 = vmatpush1.bf16.msra.mxu0 %v3000_v44  ;;  %2488 = vmatprep.subr.bf16.mxu1 %v2865_v45  ;;  %v2944_v44 = vcombine.low %v864_v32, %v868_v33  ;;  %v3072_v45 = vcombine.low %v992_v34, %v996_v35  ;;  %v3065_v47 = vcombine.high %v984_v42, %v988_v43  ;;  %v808_v33 = vld [vmem:[#allocation10 + $0x210] sm:$0xff] }
 0x23d   :  { %2529 = vmatprep.subr.bf16.mxu0 %v2993_v46  ;;  %v2937_v46 = vcombine.high %v856_v40, %v860_v41  ;;  %v812_v34 = vld [vmem:[#allocation10 + $0x230] sm:$0xff] }
 0x23e   :  { %v936_v35 = vld [vmem:[#allocation10 + $0x610] sm:$0xff] }
 0x23f   :  { %2489 = vmatpush1.bf16.msra.mxu1 %v2864_v53  ;;  %v980_v53 = vld [vmem:[#allocation10 + $0x770] sm:$0xff] }
 0x240   :  { %2530 = vmatpush1.bf16.msra.mxu0 %v2992_v54  ;;  %2490 = vmatprep.subr.bf16.mxu1 %v2857_v55  ;;  %v2936_v54 = vcombine.low %v856_v40, %v860_v41  ;;  %v3064_v55 = vcombine.low %v984_v42, %v988_v43  ;;  %v3057_v57 = vcombine.high %v976_v52, %v980_v53  ;;  %v801_v41 = vld [vmem:[#allocation10 + $0x1d8] sm:$0xff] }
 0x241   :  { %2531 = vmatprep.subr.bf16.mxu0 %v2985_v56  ;;  %v2929_v56 = vcombine.high %v848_v48, %v852_v50  ;;  %v805_v42 = vld [vmem:[#allocation10 + $0x1f8] sm:$0xff] }
 0x242   :  { %v929_v43 = vld [vmem:[#allocation10 + $0x5d8] sm:$0xff] }
 0x243   :  { %2491 = vmatpush1.bf16.msra.mxu1 %v2856_v61  ;;  %v972_v61 = vld [vmem:[#allocation10 + $0x730] sm:$0xff] }
 0x244   :  { %2532 = vmatpush1.bf16.msra.mxu0 %v2984_v62  ;;  %2492 = vmatprep.subr.bf16.mxu1 %v2849_v63  ;;  %v2928_v62 = vcombine.low %v848_v48, %v852_v50  ;;  %v3056_v63 = vcombine.low %v976_v52, %v980_v53  ;;  %v3049_v1 = vcombine.high %v968_v60, %v972_v61  ;;  %v793_v50 = vld [vmem:[#allocation10 + $0x198] sm:$0xff] }
 0x245   :  { %2533 = vmatprep.subr.bf16.mxu0 %v2977_v0  ;;  %v2921_v0 = vcombine.high %v840_v58, %v844_v59  ;;  %v797_v52 = vld [vmem:[#allocation10 + $0x1b8] sm:$0xff]  ;;  %v2882_v53 = vcombine.low %v801_v41, %v805_v42 }
 0x247   :  { %2493 = vmatpush1.bf16.msra.mxu1 %v2848_v5  ;;  %v964_v5 = vld [vmem:[#allocation10 + $0x6f0] sm:$0xff] }
 0x248   :  { %2534 = vmatpush1.bf16.msra.mxu0 %v2976_v6  ;;  %2494 = vmatprep.subr.bf16.mxu1 %v2841_v7  ;;  %v2920_v6 = vcombine.low %v840_v58, %v844_v59  ;;  %v3048_v7 = vcombine.low %v968_v60, %v972_v61  ;;  %v3041_v9 = vcombine.high %v960_v4, %v964_v5  ;;  %v785_v58 = vld [vmem:[#allocation10 + $0x158] sm:$0xff] }
 0x249   :  { %2535 = vmatprep.subr.bf16.mxu0 %v2969_v8  ;;  %v2913_v8 = vcombine.high %v832_v2, %v836_v3  ;;  %v789_v59 = vld [vmem:[#allocation10 + $0x178] sm:$0xff] }
 0x24a   :  { %v913_v61 = vld [vmem:[#allocation10 + $0x558] sm:$0xff] }
 0x24b   :  { %2495 = vmatpush1.bf16.msra.mxu1 %v2840_v17  ;;  %v956_v17 = vld [vmem:[#allocation10 + $0x6b0] sm:$0xff] }
 0x24c   :  { %2536 = vmatpush1.bf16.msra.mxu0 %v2968_v18  ;;  %2496 = vmatprep.subr.bf16.mxu1 %v2833_v19  ;;  %v2912_v18 = vcombine.low %v832_v2, %v836_v3  ;;  %v3040_v19 = vcombine.low %v960_v4, %v964_v5  ;;  %v3033_v21 = vcombine.high %v952_v16, %v956_v17  ;;  %v777_v3 = vld [vmem:[#allocation10 + $0x118] sm:$0xff] }
 0x24d   :  { %2537 = vmatprep.subr.bf16.mxu0 %v2961_v20  ;;  %v2905_v20 = vcombine.high %v824_v10, %v828_v11  ;;  %v781_v4 = vld [vmem:[#allocation10 + $0x138] sm:$0xff] }
 0x24e   :  { %v905_v5 = vld [vmem:[#allocation10 + $0x518] sm:$0xff] }
 0x24f   :  { %2497 = vmatpush1.bf16.msra.mxu1 %v2832_v25  ;;  %v948_v25 = vld [vmem:[#allocation10 + $0x670] sm:$0xff] }
 0x250   :  { %2538 = vmatpush1.bf16.msra.mxu0 %v2960_v26  ;;  %2498 = vmatprep.subr.bf16.mxu1 %v2825_v29  ;;  %v2904_v26 = vcombine.low %v824_v10, %v828_v11  ;;  %v3032_v29 = vcombine.low %v952_v16, %v956_v17  ;;  %v3025_v32 = vcombine.high %v944_v24, %v948_v25  ;;  %v769_v10 = vld [vmem:[#allocation10 + $0xd8] sm:$0xff] }
 0x251   :  { %2539 = vmatprep.subr.bf16.mxu0 %v2953_v31  ;;  %v2897_v31 = vcombine.high %v816_v22, %v820_v23  ;;  %v773_v11 = vld [vmem:[#allocation10 + $0xf8] sm:$0xff] }
 0x252   :  { %v897_v16 = vld [vmem:[#allocation10 + $0x4d8] sm:$0xff] }
 0x253   :  { %2499 = vmatpush1.bf16.msra.mxu1 %v2824_v36  ;;  %v940_v36 = vld [vmem:[#allocation10 + $0x630] sm:$0xff]  ;;  %v901_v17 = vld [vmem:[#allocation10 + $0x4f8] sm:$0xff] }
 0x254   :  { %2540 = vmatpush1.bf16.msra.mxu0 %v2952_v37  ;;  %2500 = vmatprep.subr.bf16.mxu1 %v2945_v38  ;;  %v2896_v37 = vcombine.low %v816_v22, %v820_v23  ;;  %v3024_v38 = vcombine.low %v944_v24, %v948_v25  ;;  %v3017_v40 = vcombine.high %v936_v35, %v940_v36  ;;  %v765_v22 = vld [vmem:[#allocation10 + $0xb8] sm:$0xff] }
 0x255   :  { %2541 = vmatprep.subr.bf16.mxu0 %v3073_v39  ;;  %v2889_v39 = vcombine.high %v808_v33, %v812_v34  ;;  %v889_v23 = vld [vmem:[#allocation10 + $0x498] sm:$0xff]  ;;  %v2850_v25 = vcombine.low %v769_v10, %v773_v11 }
 0x256   :  { %v893_v24 = vld [vmem:[#allocation10 + $0x4b8] sm:$0xff] }
 0x257   :  { %2501 = vmatpush2.bf16.msra.mxu1 %v2944_v44  ;;  %v933_v44 = vld [vmem:[#allocation10 + $0x5f8] sm:$0xff] }
 0x258   :  { %2542 = vmatpush2.bf16.msra.mxu0 %v3072_v45  ;;  %2502 = vmatprep.subr.bf16.mxu1 %v2937_v46  ;;  %v2888_v45 = vcombine.low %v808_v33, %v812_v34  ;;  %v3016_v46 = vcombine.low %v936_v35, %v940_v36  ;;  %v3011_v48 = vcombine.high %v929_v43, %v933_v44  ;;  %v757_v33 = vld [vmem:[#allocation10 + $0x78] sm:$0xff] }
 0x259   :  { %2543 = vmatprep.subr.bf16.mxu0 %v3065_v47  ;;  %v2883_v47 = vcombine.high %v801_v41, %v805_v42  ;;  %v881_v34 = vld [vmem:[#allocation10 + $0x458] sm:$0xff] }
 0x25a   :  { %v885_v35 = vld [vmem:[#allocation10 + $0x478] sm:$0xff] }
 0x25b   :  { %2503 = vmatpush2.bf16.msra.mxu1 %v2936_v54  ;;  %v921_v54 = vld [vmem:[#allocation10 + $0x598] sm:$0xff] }
 0x25c   :  { %2544 = vmatpush2.bf16.msra.mxu0 %v3064_v55  ;;  %2504 = vmatprep.subr.bf16.mxu1 %v2929_v56  ;;  %v925_v55 = vld [vmem:[#allocation10 + $0x5b8] sm:$0xff]  ;;  %v3010_v56 = vcombine.low %v929_v43, %v933_v44 }
 0x25d   :  { %2545 = vmatprep.subr.bf16.mxu0 %v3057_v57  ;;  %v2875_v57 = vcombine.high %v793_v50, %v797_v52  ;;  %v3003_v60 = vcombine.high %v921_v54, %v925_v55  ;;  %v749_v41 = vld [vmem:[#allocation10 + $0x38] sm:$0xff] }
 0x25e   :  { %v873_v42 = vld [vmem:[#allocation10 + $0x418] sm:$0xff] }
 0x25f   :  { %2505 = vmatpush2.bf16.msra.mxu1 %v2928_v62  ;;  %v917_v62 = vld [vmem:[#allocation10 + $0x578] sm:$0xff] }
 0x260   :  { %2546 = vmatpush2.bf16.msra.mxu0 %v3056_v63  ;;  %2506 = vmatprep.subr.bf16.mxu1 %v2921_v0  ;;  %v2874_v63 = vcombine.low %v793_v50, %v797_v52  ;;  %v3002_v0 = vcombine.low %v921_v54, %v925_v55  ;;  %v2995_v2 = vcombine.high %v913_v61, %v917_v62  ;;  %v877_v43 = vld [vmem:[#allocation10 + $0x438] sm:$0xff] }
 0x261   :  { %2547 = vmatprep.subr.bf16.mxu0 %v3049_v1  ;;  %v2867_v1 = vcombine.high %v785_v58, %v789_v59  ;;  %v869_v50 = vld [vmem:[#allocation10 + $0x3f8] sm:$0xff]  ;;  %v2954_v55 = vcombine.low %v873_v42, %v877_v43 }
 0x262   :  { %v993_v52 = vld [vmem:[#allocation10 + $0x7d8] sm:$0xff] }
 0x263   :  { %2507 = vmatpush2.bf16.msra.mxu1 %v2920_v6  ;;  %v909_v6 = vld [vmem:[#allocation10 + $0x538] sm:$0xff] }
 0x264   :  { %2548 = vmatpush2.bf16.msra.mxu0 %v3048_v7  ;;  %2508 = vmatprep.subr.bf16.mxu1 %v2913_v8  ;;  %v2866_v7 = vcombine.low %v785_v58, %v789_v59  ;;  %v2994_v8 = vcombine.low %v913_v61, %v917_v62  ;;  %v857_v58 = vld [vmem:[#allocation10 + $0x398] sm:$0xff] }
 0x265   :  { %2549 = vmatprep.subr.bf16.mxu0 %v3041_v9  ;;  %v2859_v9 = vcombine.high %v777_v3, %v781_v4  ;;  %v861_v59 = vld [vmem:[#allocation10 + $0x3b8] sm:$0xff] }
 0x266   :  { %v989_v61 = vld [vmem:[#allocation10 + $0x7b8] sm:$0xff] }
 0x267   :  { %2509 = vmatpush2.bf16.msra.mxu1 %v2912_v18  ;;  %v2986_v18 = vcombine.low %v905_v5, %v909_v6 }
 0x268   :  { %2550 = vmatpush2.bf16.msra.mxu0 %v3040_v19  ;;  %2510 = vmatprep.subr.bf16.mxu1 %v2905_v20  ;;  %v2851_v19 = vcombine.high %v769_v10, %v773_v11  ;;  %v2979_v20 = vcombine.high %v897_v16, %v901_v17  ;;  %v845_v10 = vld [vmem:[#allocation10 + $0x338] sm:$0xff] }
 0x269   :  { %2551 = vmatprep.subr.bf16.mxu0 %v3033_v21  ;;  %v761_v21 = vld [vmem:[#allocation10 + $0x98] sm:$0xff] }
 0x26a   :  { %v2842_v36 = vcombine.low %v761_v21, %v765_v22  ;;  %v969_v11 = vld [vmem:[#allocation10 + $0x718] sm:$0xff] }
 0x26b   :  { %2511 = vmatpush2.bf16.msra.mxu1 %v2904_v26  ;;  %v2978_v26 = vcombine.low %v897_v16, %v901_v17  ;;  %v973_v16 = vld [vmem:[#allocation10 + $0x738] sm:$0xff] }
 0x26c   :  { %2552 = vmatpush2.bf16.msra.mxu0 %v3032_v29  ;;  %2512 = vmatprep.subr.bf16.mxu1 %v2897_v31  ;;  %v2843_v29 = vcombine.high %v761_v21, %v765_v22  ;;  %v2971_v31 = vcombine.high %v889_v23, %v893_v24  ;;  %v837_v21 = vld [vmem:[#allocation10 + $0x2f8] sm:$0xff] }
 0x26d   :  { %2553 = vmatprep.subr.bf16.mxu0 %v3025_v32  ;;  %v753_v32 = vld [vmem:[#allocation10 + $0x58] sm:$0xff] }
 0x26e   :  { %v2834_v44 = vcombine.low %v753_v32, %v757_v33  ;;  %v961_v22 = vld [vmem:[#allocation10 + $0x6d8] sm:$0xff] }
 0x26f   :  { %2513 = vmatpush2.bf16.msra.mxu1 %v2896_v37  ;;  %v2970_v37 = vcombine.low %v889_v23, %v893_v24  ;;  %v965_v23 = vld [vmem:[#allocation10 + $0x6f8] sm:$0xff] }
 0x270   :  { %2554 = vmatpush2.bf16.msra.mxu0 %v3024_v38  ;;  %2514 = vmatprep.subr.bf16.mxu1 %v2889_v39  ;;  %v2835_v38 = vcombine.high %v753_v32, %v757_v33  ;;  %v2963_v39 = vcombine.high %v881_v34, %v885_v35  ;;  %v829_v32 = vld [vmem:[#allocation10 + $0x2b8] sm:$0xff] }
 0x271   :  { %2555 = vmatprep.subr.bf16.mxu0 %v3017_v40  ;;  %v745_v40 = vld [vmem:[#allocation10 + $0x18] sm:$0xff] }
 0x272   :  { %v2826_v54 = vcombine.low %v745_v40, %v749_v41  ;;  %v953_v33 = vld [vmem:[#allocation10 + $0x698] sm:$0xff] }
 0x273   :  { %2515 = vmatpush2.bf16.msra.mxu1 %v2888_v45  ;;  %v2962_v45 = vcombine.low %v881_v34, %v885_v35  ;;  %v957_v34 = vld [vmem:[#allocation10 + $0x6b8] sm:$0xff] }
 0x274   :  { %2556 = vmatpush2.bf16.msra.mxu0 %v3016_v46  ;;  %2566 = vmatprep.subr.bf16.mxu1 %v2883_v47  ;;  %v2827_v46 = vcombine.high %v745_v40, %v749_v41  ;;  %v2955_v47 = vcombine.high %v873_v42, %v877_v43  ;;  %v821_v40 = vld [vmem:[#allocation10 + $0x278] sm:$0xff] }
 0x275   :  { %2607 = vmatprep.subr.bf16.mxu0 %v3011_v48  ;;  %v865_v48 = vld [vmem:[#allocation10 + $0x3d8] sm:$0xff] }
 0x276   :  { %2517 = vmatmul.mubr.bf16.vlgmr.msra.gmra.mxu1 %v3436_v14  ;;  %v2946_v62 = vcombine.low %v865_v48, %v869_v50  ;;  %v945_v41 = vld [vmem:[#allocation10 + $0x658] sm:$0xff] }
 0x277   :  { %2558 = vmatmul.mubr.bf16.vlgmr.msra.gmra.mxu0 %v3438_v15  ;;  %2567 = vmatpush1.bf16.msra.mxu1 %v2882_v53  ;;  %v997_v53 = vld [vmem:[#allocation10 + $0x7f8] sm:$0xff] }
 0x278   :  { %2598 = vmatprep.mubr.bf16.mxu1 %v3432_v12  ;;  %2608 = vmatpush1.bf16.msra.mxu0 %v3010_v56  ;;  %v2987_v12 = vcombine.high %v905_v5, %v909_v6  ;;  %v2947_v56 = vcombine.high %v865_v48, %v869_v50  ;;  %v981_v5 = vld [vmem:[#allocation10 + $0x778] sm:$0xff]  ;;  %v2938_v6 = vcombine.low %v857_v58, %v861_v59 }
 0x279   :  { %2639 = vmatprep.mubr.bf16.mxu0 %v3434_v13  ;;  %2568 = vmatprep.subr.bf16.mxu1 %v2875_v57  ;;  %v2858_v13 = vcombine.low %v777_v3, %v781_v4  ;;  %v3075_v57 = vcombine.high %v993_v52, %v997_v53  ;;  %v853_v3 = vld [vmem:[#allocation10 + $0x378] sm:$0xff] }
 0x27a   :  { %2609 = vmatprep.subr.bf16.mxu0 %v3003_v60  ;;  %v985_v60 = vld [vmem:[#allocation10 + $0x798] sm:$0xff] }
 0x27b   :  { %2569 = vmatpush1.bf16.msra.mxu1 %v2874_v63  ;;  %v3074_v63 = vcombine.low %v993_v52, %v997_v53  ;;  %v977_v4 = vld [vmem:[#allocation10 + $0x758] sm:$0xff] }
 0x27c   :  { %2610 = vmatpush1.bf16.msra.mxu0 %v3002_v0  ;;  %2570 = vmatprep.subr.bf16.mxu1 %v2867_v1  ;;  %v2939_v0 = vcombine.high %v857_v58, %v861_v59  ;;  %v3067_v1 = vcombine.high %v985_v60, %v989_v61  ;;  %v949_v42 = vld [vmem:[#allocation10 + $0x678] sm:$0xff] }
 0x27d   :  { %2611 = vmatprep.subr.bf16.mxu0 %v2995_v2  ;;  %v849_v2 = vld [vmem:[#allocation10 + $0x358] sm:$0xff] }
 0x27e   :  { %v2930_v17 = vcombine.low %v849_v2, %v853_v3  ;;  %v813_v48 = vld [vmem:[#allocation10 + $0x238] sm:$0xff] }
 0x27f   :  { %2571 = vmatpush1.bf16.msra.mxu1 %v2866_v7  ;;  %v3066_v7 = vcombine.low %v985_v60, %v989_v61  ;;  %v937_v50 = vld [vmem:[#allocation10 + $0x618] sm:$0xff] }
 0x280   :  { %2612 = vmatpush1.bf16.msra.mxu0 %v2994_v8  ;;  %2572 = vmatprep.subr.bf16.mxu1 %v2859_v9  ;;  %v2931_v8 = vcombine.high %v849_v2, %v853_v3  ;;  %v3059_v9 = vcombine.high %v977_v4, %v981_v5  ;;  %v941_v52 = vld [vmem:[#allocation10 + $0x638] sm:$0xff] }
 0x281   :  { %2613 = vmatprep.subr.bf16.mxu0 %v2987_v12  ;;  %v841_v12 = vld [vmem:[#allocation10 + $0x318] sm:$0xff]  ;;  %v3018_v58 = vcombine.low %v937_v50, %v941_v52 }
 0x282   :  { %v2922_v24 = vcombine.low %v841_v12, %v845_v10  ;;  %v3457_v59 = vld [vmem:[%s3489_s6] sm:$0xff]  ;;  %s3355_s6 = smov [#allocation11]  }
 0x283   :  { %2573 = vmatpush1.bf16.msra.mxu1 %v2858_v13  ;;  %v3058_v13 = vcombine.low %v977_v4, %v981_v5  ;;  %v1003_v60 = vrot.slane %v3457_v59, %v3414_v28  ;;  %v1007_v61 = vrot.slane %v3457_v59, %v3420_v30  ;;  %v1011_v30 = vrot.slane %v3457_v59, %v322_v49  ;;  %s2729_s8 = sshll.u32 %s3355_s6, 4  ;;  %s2730_s8 = int_to_ptr.vmem [resolvable:$true] %s2729_s8 }
 0x284   :  { %2614 = vmatpush1.bf16.msra.mxu0 %v2986_v18  ;;  %2574 = vmatprep.subr.bf16.mxu1 %v2851_v19  ;;  %v2923_v18 = vcombine.high %v841_v12, %v845_v10  ;;  %v3051_v19 = vcombine.high %v969_v11, %v973_v16  ;;  %s3314_s9 = scalar_lea.vmem %s2730_s8, 128  ;;  %p3319_p12 = scmp.lt.s32.totalorder %s2730_s8, %s2730_s8 }
 0x285   :  { %2615 = vmatprep.subr.bf16.mxu0 %v2979_v20  ;;  %v833_v20 = vld [vmem:[#allocation10 + $0x2d8] sm:$0xff]  ;;  %p3315_p11 = scmp.ne.s32.totalorder %s2730_s8, %s3314_s9  ;;  %p3320_p13 = scmp.lt.s32.totalorder %s3314_s9, %s3314_s9 }
 0x286   :  { %v2914_v35 = vcombine.low %v833_v20, %v837_v21 }
 0x287   :  { %2575 = vmatpush1.bf16.msra.mxu1 %v2850_v25  ;;  %v3050_v25 = vcombine.low %v969_v11, %v973_v16  ;;  %p3321_p0 = por %p3320_p13, %p3319_p12 }
 0x288   :  { %2616 = vmatpush1.bf16.msra.mxu0 %v2978_v26  ;;  %2576 = vmatprep.subr.bf16.mxu1 %v2843_v29  ;;  %v2915_v26 = vcombine.high %v833_v20, %v837_v21  ;;  %v3043_v29 = vcombine.high %v961_v22, %v965_v23 }
 0x289   :  { %2617 = vmatprep.subr.bf16.mxu0 %v2971_v31  ;;  %v825_v31 = vld [vmem:[#allocation10 + $0x298] sm:$0xff]  ;;  %p3322_p1 = pnand %p3321_p0, %p3315_p11 }
 0x28a   :  { %v2906_v43 = vcombine.low %v825_v31, %v829_v32 }
 0x28b   :  { %2577 = vmatpush1.bf16.msra.mxu1 %v2842_v36  ;;  %v3042_v36 = vcombine.low %v961_v22, %v965_v23 }
 0x28c   :  { %2618 = vmatpush1.bf16.msra.mxu0 %v2970_v37  ;;  %2578 = vmatprep.subr.bf16.mxu1 %v2835_v38  ;;  %v2907_v37 = vcombine.high %v825_v31, %v829_v32  ;;  %v3035_v38 = vcombine.high %v953_v33, %v957_v34 }
 0x28d   :  { %2619 = vmatprep.subr.bf16.mxu0 %v2963_v39  ;;  %v817_v39 = vld [vmem:[#allocation10 + $0x258] sm:$0xff] }
 0x28e   :  { %v2898_v53 = vcombine.low %v817_v39, %v821_v40 }
 0x28f   :  { %2579 = vmatpush1.bf16.msra.mxu1 %v2834_v44  ;;  %v3034_v44 = vcombine.low %v953_v33, %v957_v34 }
 0x290   :  { %2620 = vmatpush1.bf16.msra.mxu0 %v2962_v45  ;;  %2580 = vmatprep.subr.bf16.mxu1 %v2827_v46  ;;  %v2899_v45 = vcombine.high %v817_v39, %v821_v40  ;;  %v3027_v46 = vcombine.high %v945_v41, %v949_v42 }
 0x291   :  { %2621 = vmatprep.subr.bf16.mxu0 %v2955_v47  ;;  %v809_v47 = vld [vmem:[#allocation10 + $0x218] sm:$0xff] }
 0x293   :  { %2581 = vmatpush1.bf16.msra.mxu1 %v2826_v54  ;;  %v3026_v54 = vcombine.low %v945_v41, %v949_v42 }
 0x294   :  { %2622 = vmatpush1.bf16.msra.mxu0 %v2954_v55  ;;  %2582 = vmatprep.subr.bf16.mxu1 %v2947_v56  ;;  %v2891_v55 = vcombine.high %v809_v47, %v813_v48  ;;  %v3019_v56 = vcombine.high %v937_v50, %v941_v52 }
 0x295   :  { %2623 = vmatprep.subr.bf16.mxu0 %v3075_v57  ;;  %v2890_v57 = vcombine.low %v809_v47, %v813_v48 }
 0x297   :  { %2583 = vmatpush2.bf16.msra.mxu1 %v2946_v62 }
 0x298   :  { %2624 = vmatpush2.bf16.msra.mxu0 %v3074_v63  ;;  %2584 = vmatprep.subr.bf16.mxu1 %v2939_v0 }
 0x299   :  { %2625 = vmatprep.subr.bf16.mxu0 %v3067_v1 }
 0x29b   :  { %2585 = vmatpush2.bf16.msra.mxu1 %v2938_v6 }
 0x29c   :  { %2626 = vmatpush2.bf16.msra.mxu0 %v3066_v7  ;;  %2586 = vmatprep.subr.bf16.mxu1 %v2931_v8 }
 0x29d   :  { %2627 = vmatprep.subr.bf16.mxu0 %v3059_v9 }
 0x29f   :  { %2587 = vmatpush2.bf16.msra.mxu1 %v2930_v17 }
 0x2a0   :  { %2628 = vmatpush2.bf16.msra.mxu0 %v3058_v13  ;;  %2588 = vmatprep.subr.bf16.mxu1 %v2923_v18 }
 0x2a1   :  { %2629 = vmatprep.subr.bf16.mxu0 %v3051_v19 }
 0x2a3   :  { %2589 = vmatpush2.bf16.msra.mxu1 %v2922_v24 }
 0x2a4   :  { %2630 = vmatpush2.bf16.msra.mxu0 %v3050_v25  ;;  %2590 = vmatprep.subr.bf16.mxu1 %v2915_v26 }
 0x2a5   :  { %2631 = vmatprep.subr.bf16.mxu0 %v3043_v29 }
 0x2a7   :  { %2591 = vmatpush2.bf16.msra.mxu1 %v2914_v35 }
 0x2a8   :  { %2632 = vmatpush2.bf16.msra.mxu0 %v3042_v36  ;;  %2592 = vmatprep.subr.bf16.mxu1 %v2907_v37  ;;  %v1018_v36 = vsub.s32 4, %v3411_v27  ;;  %v1022_v37 = vsub.s32 5, %v3411_v27 }
 0x2a9   :  { %2633 = vmatprep.subr.bf16.mxu0 %v3035_v38 }
 0x2aa   :  { %v1019_v38 = vrot.slane %v3457_v59, %v1018_v36  ;;  %v1023_v39 = vrot.slane %v3457_v59, %v1022_v37 }
 0x2ab   :  { %2593 = vmatpush2.bf16.msra.mxu1 %v2906_v43 }
 0x2ac   :  { %2634 = vmatpush2.bf16.msra.mxu0 %v3034_v44  ;;  %2594 = vmatprep.subr.bf16.mxu1 %v2899_v45 }
 0x2ad   :  { %2635 = vmatprep.subr.bf16.mxu0 %v3027_v46 }
 0x2af   :  { %2595 = vmatpush2.bf16.msra.mxu1 %v2898_v53 }
 0x2b0   :  { %2636 = vmatpush2.bf16.msra.mxu0 %v3026_v54  ;;  %2596 = vmatprep.subr.bf16.mxu1 %v2891_v55 }
 0x2b1   :  { %2637 = vmatprep.subr.bf16.mxu0 %v3019_v56 }
 0x2b3   :  { %2597 = vmatpush2.bf16.msra.mxu1 %v2890_v57  ;;  %v1026_v57 = vsub.s32 6, %v3411_v27 }
 0x2b4   :  { %2638 = vmatpush2.bf16.msra.mxu0 %v3018_v58  ;;  %v1030_v58 = vsub.s32 7, %v3411_v27 }
 0x2b6   :  { %2599 = vmatmul.mubr.bf16.vlgmr.msra.gmra.mxu1 %v3436_v14  ;;  %v2354_v62 = vpop.f32.mrf.mxu1  ;;  %v2395_v63 = vpop.f32.mrf.mxu0  ;;  %v3354_v14 = vmov 1966171168  }
 0x2b7   :  { %2640 = vmatmul.mubr.bf16.vlgmr.msra.gmra.mxu0 %v3438_v15  ;;  %v2355_v0 = vadd.f32 %v2354_v62, %v1003_v60  ;;  %v2677_v11 = vunpack.c.l.s4 %v3354_v14  ;;  %v1015_v15 = vrot.slane %v3457_v59, %v326_v51  ;;  %v1027_v60 = vrot.slane %v3457_v59, %v1026_v57 }
 0x2b8   :  { %v2356_v1 = vpop.f32.mrf.mxu1  ;;  %v2397_v2 = vpop.f32.mrf.mxu0 }
 0x2b9   :  { %v2396_v3 = vadd.f32 %v2395_v63, %v2355_v0  ;;  %v2357_v4 = vadd.f32 %v2356_v1, %v1007_v61  ;;  %v2678_v20 = vunpack.c.0.s8 %v2677_v11  ;;  %v1031_v61 = vrot.slane %v3457_v59, %v1030_v58 }
 0x2ba   :  { %v2358_v5 = vpop.f32.mrf.mxu1  ;;  %v2399_v6 = vpop.f32.mrf.mxu0 }
 0x2bb   :  { %v2398_v7 = vadd.f32 %v2397_v2, %v2357_v4  ;;  %v2648_v9 = vmax.f32 %v2396_v3, 0.0  ;;  %v2681_v49 = vsub.s32 %v2678_v20, %v3411_v27 }
 0x2bc   :  { %v2359_v8 = vpop.f32.mrf.mxu1  ;;  %v2400_v28 = vpop.f32.mrf.mxu0 }
 0x2bd   :  { %v2649_v12 = vmax.f32 %v2398_v7, 0.0 }
 0x2bf   :  { %v3076_v10 = vpack.c.bf16 %v2649_v12, %v2648_v9 }
 0x2c1   :  { %v2682_v34 = vrot.slane %v3076_v10, %v2681_v49 }
 0x2f6   :  { %v2436_v16 = vpop.f32.mrf.mxu1  ;;  %v2477_v17 = vpop.f32.mrf.mxu0 }
 0x2f7   :  { %v2437_v13 = vadd.f32 %v2436_v16, %v1011_v30 }
 0x2f8   :  { %v2438_v18 = vpop.f32.mrf.mxu1  ;;  %v2479_v19 = vpop.f32.mrf.mxu0 }
 0x2f9   :  { %v2478_v21 = vadd.f32 %v2477_v17, %v2437_v13  ;;  %v2439_v22 = vadd.f32 %v2438_v18, %v1015_v15 }
 0x2fa   :  { %v2440_v23 = vpop.f32.mrf.mxu1  ;;  %v2481_v24 = vpop.f32.mrf.mxu0 }
 0x2fb   :  { %v2480_v25 = vadd.f32 %v2479_v19, %v2439_v22  ;;  %v2650_v31 = vmax.f32 %v2478_v21, 0.0 }
 0x2fc   :  { %v2441_v26 = vpop.f32.mrf.mxu1  ;;  %v2482_v29 = vpop.f32.mrf.mxu0 }
 0x2fd   :  { %v2651_v32 = vmax.f32 %v2480_v25, 0.0 }
 0x2ff   :  { %v3077_v33 = vpack.c.bf16 %v2651_v32, %v2650_v31 }
 0x301   :  { %v2689_v51 = vrot.slane %v3077_v33, %v2681_v49 }
 0x303   :  { %v2704_v35 = vcombine.low %v2682_v34, %v2689_v51 }
 0x305   :  { %v2712_v59 = vrot.slane %v2704_v35, %v2681_v49 }
 0x336   :  { %v2518_v40 = vpop.f32.mrf.mxu1 }
 0x337   :  { %v2519_v41 = vadd.f32 %v2518_v40, %v1019_v38  ;;  %v2559_v42 = vpop.f32.mrf.mxu0 }
 0x338   :  { %v2520_v43 = vpop.f32.mrf.mxu1 }
 0x339   :  { %v2560_v44 = vadd.f32 %v2559_v42, %v2519_v41  ;;  %v2521_v45 = vadd.f32 %v2520_v43, %v1023_v39  ;;  %v2561_v46 = vpop.f32.mrf.mxu0 }
 0x33a   :  { %v2522_v47 = vpop.f32.mrf.mxu1 }
 0x33b   :  { %v2562_v48 = vadd.f32 %v2561_v46, %v2521_v45  ;;  %v2563_v50 = vpop.f32.mrf.mxu0  ;;  %v2652_v53 = vmax.f32 %v2560_v44, 0.0 }
 0x33c   :  { %v2523_v52 = vpop.f32.mrf.mxu1 }
 0x33d   :  { %v2653_v54 = vmax.f32 %v2562_v48, 0.0  ;;  %v2564_v55 = vpop.f32.mrf.mxu0 }
 0x33f   :  { %v3078_v56 = vpack.c.bf16 %v2653_v54, %v2652_v53 }
 0x341   :  { %v2696_v27 = vrot.slane %v3078_v56, %v2681_v49 }
 0x376   :  { %v2600_v62 = vpop.f32.mrf.mxu1 }
 0x377   :  { %v2601_v63 = vadd.f32 %v2600_v62, %v1027_v60  ;;  %v2641_v0 = vpop.f32.mrf.mxu0 }
 0x378   :  { %v2602_v1 = vpop.f32.mrf.mxu1 }
 0x379   :  { %v2642_v2 = vadd.f32 %v2641_v0, %v2601_v63  ;;  %v2603_v3 = vadd.f32 %v2602_v1, %v1031_v61  ;;  %v2643_v4 = vpop.f32.mrf.mxu0 }
 0x37a   :  { %v2604_v5 = vpop.f32.mrf.mxu1 }
 0x37b   :  { %v2644_v6 = vadd.f32 %v2643_v4, %v2603_v3  ;;  %v2645_v7 = vpop.f32.mrf.mxu0  ;;  %v2654_v28 = vmax.f32 %v2642_v2, 0.0 }
 0x37c   :  { %v2605_v8 = vpop.f32.mrf.mxu1 }
 0x37d   :  { %v2655_v9 = vmax.f32 %v2644_v6, 0.0  ;;  %v2646_v12 = vpop.f32.mrf.mxu0 }
 0x37f   :  { %v3079_v10 = vpack.c.bf16 %v2655_v9, %v2654_v28 }
 0x381   :  { %v2703_v30 = vrot.slane %v3079_v10, %v2681_v49 }
 0x383   :  { %v2705_v14 = vcombine.low %v2696_v27, %v2703_v30 }
 0x385   :  { %v2719_v11 = vrot.slane %v2705_v14, %v2681_v49 }
 0x387   :  { %v2720_v15 = vcombine.low %v2712_v59, %v2719_v11 }
 0x389   :  { %2722 = vst [vmem:[#allocation11] sm:$0xff] %v2720_v15 }
 0x38a   :  { %3325 = shalt.err (!%p3322_p1)
}
 0x38b   :  { %2732 = dma.vmem_to_hbm [thread:$0]  %s2730_s8, 128, %s3490_s7, [#allocation4]  }
 0x38c   :  { %3340 = dma.done.wait [#allocation4], 128  }
 0x38d   :  { %3341 = vsyncadd [#allocation4], 4294967168 }
 0x38e   :  { %2736 = vsyncpa [#allocation3], 1 }
 0x38f   :  { %2737 = vsyncpa [#allocation6], 1 }
 0x390   :  { %2738 = vsyncpa [#allocation9], 1 }
 0x391   :  { %2739 = vsyncpa [#allocation4], 1 }

</bundles_post_ra>
